<compile_context>
chip_gen: v6e
topology: v6e:2x2x1
jax: 0.10.0
libtpu: 0.0.40
codegen_flags: <defaults>
</compile_context>

<pallas_src>
import functools

import jax
import jax.numpy as jnp
from jax import lax
from jax.experimental import pallas as pl
from jax.experimental.pallas import tpu as pltpu
import numpy as np


def _round_up(a, m):
    return (a + m - 1) // m * m


def _cdiv(a, b):
    return (a + b - 1) // b


def _pick_batch_tile(B, max_tile=128):
    """Fill MXU rows (up to 128) but keep >=2 grid tiles so v7x's 2 TCs both get work."""
    b8 = _round_up(max(B, 1), 8)
    if b8 <= 8:
        return 8
    if b8 <= max_tile:
        return _round_up(_cdiv(b8, 2), 8)
    return max_tile


def _const_spec(block_shape):
    """Grid-invariant (weight) input: single-buffer it if pipeline_mode is supported."""
    index_map = lambda i, c: (0,) * len(block_shape)
    try:
        return pl.BlockSpec(block_shape, index_map, pipeline_mode=pl.Buffered(1))
    except Exception:  # older BlockSpec without pipeline_mode -> default double buffering
        return pl.BlockSpec(block_shape, index_map)


def bigru_kernel(emb_ref,      # (1, TC*TB, 2E)  [fwd emb | time-reversed emb] chunk
                 wih_ref,      # (2E, 3G)  stacked [wih_f ; wih_b], gate-major slabs
                 whh_ref,      # (G, 3G)   fused block-diagonal hidden->hidden (both dirs)
                 bgi_ref,      # (1, 3G)   b_ih (+ b_hh for r,z) folded, both dirs
                 bhn_ref,      # (1, G)    b_hh of the n gate (both dirs)
                 w1_ref,       # (G, Fp)   fc1, zero-padded / lane aligned
                 b1_ref,       # (1, Fp)
                 w2_ref,       # (Fp, OP)  fc2, zero-padded / lane-dense output
                 b2_ref,       # (1, OP)
                 out_ref,      # (TB, OP)  logits live in column 0
                 gi_scr,       # VMEM (TC*TB, 3G) f32: per-chunk precomputed input gates
                 h_scr,        # VMEM (TB, G) f32: carry [h_f | h_b | pad], persists chunks
                 *, seq_len, chunk_len, mask_tail, unroll):
    TB = out_ref.shape[0]
    G = whh_ref.shape[0]
    c = pl.program_id(1)
    n_chunks = pl.num_programs(1)

    @pl.when(c == 0)
    def _init():
        h_scr[...] = jnp.zeros_like(h_scr)

    # --- this chunk's input->hidden gates: ONE matmul, both directions pre-summed by the
    #     contraction (fwd rows 0:E hit cols 0:H of each slab, bwd rows E:2E hit H:2H) ---
    gi_scr[...] = (jnp.dot(emb_ref[0], wih_ref[...],
                           preferred_element_type=jnp.float32) + bgi_ref[...])

    whh = whh_ref[...]
    # Hoisted broadcast of the n-gate hidden bias (JAX does not CSE broadcast_in_dim).
    bhn = jnp.broadcast_to(bhn_ref[...], (TB, G))

    # Serial recurrence over this chunk: exactly one (TB, G) x (G, 3G) MXU matmul per step;
    # gate slices are at 128-lane-aligned offsets 0, G, 2G (free vreg views).
    def step(s, h):
        off = pl.multiple_of(s * TB, TB)
        gi = gi_scr[pl.ds(off, TB), :]                             # (TB, 3G)
        gh = jnp.dot(h.astype(whh.dtype), whh,
                     preferred_element_type=jnp.float32)           # (TB, 3G)
        r = jax.nn.sigmoid(gi[:, 0:G] + gh[:, 0:G])
        z = jax.nn.sigmoid(gi[:, G:2 * G] + gh[:, G:2 * G])
        n = jnp.tanh(gi[:, 2 * G:3 * G] + r * (gh[:, 2 * G:3 * G] + bhn))
        h_new = (1.0 - z) * n + z * h
        if mask_tail:  # padded time steps (t >= seq_len) must not change the state
            h_new = jnp.where(c * chunk_len + s < seq_len, h_new, h)
        return h_new

    h = lax.fori_loop(0, chunk_len, step, h_scr[...], unroll=unroll)
    h_scr[...] = h

    # --- final chunk: h[:, 0:2H] == torch.cat([h[0], h[1]], dim=1); fc1 + ReLU + fc2 ---
    @pl.when(c == n_chunks - 1)
    def _final():
        h1 = jnp.maximum(
            jnp.dot(h.astype(w1_ref.dtype), w1_ref[...],
                    preferred_element_type=jnp.float32) + b1_ref[...], 0.0)   # (TB, Fp)
        out = jnp.dot(h1.astype(w2_ref.dtype), w2_ref[...],
                      preferred_element_type=jnp.float32) + b2_ref[...]       # (TB, OP)
        out_ref[...] = out.astype(out_ref.dtype)      # lane-dense, unmasked store


def bigru_forward(x, params, *, batch_tile=None, time_chunk=64,
                  param_dtype=jnp.float32):
    """x: (B, T) int32 token ids -> (B,) float32 logits."""
    emb_tbl = params["embedding"]                      # (V, E)
    E = emb_tbl.shape[1]
    H = params["whh_f"].shape[0]
    B, T = x.shape

    TB = _pick_batch_tile(B) if batch_tile is None else batch_tile
    Bp = _round_up(B, TB)
    ntiles = Bp // TB

    G = _round_up(2 * H, 128)                          # per-gate slab width (lane aligned)
    Fp = _round_up(H, 128)                             # fc1 output, lane aligned
    OP = 128                                           # fc2 output, lane-dense slab
    esz = jnp.dtype(param_dtype).itemsize

    # ---- time chunking: bound per-chunk VMEM (double-buffered emb chunk + gi scratch) ----
    tc_target = max(1, min(T, time_chunk))
    n_chunks = _cdiv(T, tc_target)
    TC = _cdiv(T, n_chunks)

    def _chunk_bytes(tc):
        return 2 * tc * TB * 2 * E * esz + tc * TB * 3 * G * 4

    while TC > 1 and _chunk_bytes(TC) > 24 * 1024 * 1024:
        n_chunks += 1
        TC = _cdiv(T, n_chunks)
    Tp = TC * n_chunks                                 # padded sequence length (masked)

    f = lambda a: a.astype(param_dtype)

    # ---- pack & pad weights: gate-major slabs [r | z | n], fwd in cols 0:H, bwd in H:2H.
    #      wih is stacked along the contraction dim so one matmul of [emb_f | emb_rev]
    #      yields the pre-summed fwd+bwd input gates. ----
    # TODO(synk): for 2H > 128 split the hidden matmul into per-direction (H,3H) matmuls;
    # the fused block-diagonal (G,3G) form below does ~2x the needed MXU work on the serial
    # chain in that regime (it is exact and free when 2H <= 128, as here).
    wih_cat = jnp.zeros((2 * E, 3 * G), param_dtype)
    whh_big = jnp.zeros((G, 3 * G), param_dtype)
    bgi = jnp.zeros((1, 3 * G), jnp.float32)
    bhn = jnp.zeros((1, G), jnp.float32)
    for g in range(3):
        c0 = g * G
        sl = slice(g * H, (g + 1) * H)
        wih_cat = wih_cat.at[0:E, c0:c0 + H].set(f(params["wih_f"][:, sl]))
        wih_cat = wih_cat.at[E:2 * E, c0 + H:c0 + 2 * H].set(f(params["wih_b"][:, sl]))
        whh_big = whh_big.at[0:H, c0:c0 + H].set(f(params["whh_f"][:, sl]))
        whh_big = whh_big.at[H:2 * H, c0 + H:c0 + 2 * H].set(f(params["whh_b"][:, sl]))
        bf = params["bih_f"][:, sl]
        bb = params["bih_b"][:, sl]
        if g < 2:                                      # b_hh folds into gi for r,z only
            bf = bf + params["bhh_f"][:, sl]
            bb = bb + params["bhh_b"][:, sl]
        bgi = bgi.at[:, c0:c0 + H].set(bf)
        bgi = bgi.at[:, c0 + H:c0 + 2 * H].set(bb)
    bhn = bhn.at[:, 0:H].set(params["bhh_f"][:, 2 * H:3 * H])
    bhn = bhn.at[:, H:2 * H].set(params["bhh_b"][:, 2 * H:3 * H])

    w1p = jnp.zeros((G, Fp), param_dtype).at[0:2 * H, 0:H].set(f(params["w1"]))
    b1p = jnp.zeros((1, Fp), jnp.float32).at[:, 0:H].set(params["b1"])
    w2p = jnp.zeros((Fp, OP), param_dtype).at[0:H, 0:1].set(f(params["w2"]))
    b2p = jnp.zeros((1, OP), jnp.float32).at[:, 0:1].set(params["b2"])

    # ---- embed tokens in per-tile time-major order; the backward direction gets the
    #      time-reversed sequence laid side by side so the kernel needs no flips. ----
    # TODO(synk): for very large T*B*E, move the gather into the kernel (scalar-prefetched
    # ids + DMA gather from the table in HBM) and stream emb chunks manually so the next
    # chunk's gi matmul overlaps the current chunk's recurrence.
    xb = jnp.zeros((Bp, Tp), jnp.int32).at[:B, :T].set(x.astype(jnp.int32))
    xr = jnp.zeros((Bp, Tp), jnp.int32).at[:B, :T].set(x[:, ::-1].astype(jnp.int32))
    ids_f = xb.reshape(ntiles, TB, Tp).transpose(0, 2, 1).reshape(ntiles, Tp * TB)
    ids_r = xr.reshape(ntiles, TB, Tp).transpose(0, 2, 1).reshape(ntiles, Tp * TB)
    embt = f(emb_tbl)
    emb2 = jnp.concatenate([jnp.take(embt, ids_f, axis=0),
                            jnp.take(embt, ids_r, axis=0)], axis=-1)   # (ntiles, Tp*TB, 2E)

    # ---- VMEM budget (explicit scoped limit so larger TB / T never hit the 16/32 MiB
    #      defaults; capped well under v7x's 64 MiB physical for this footprint) ----
    weight_bytes = ((2 * E * 3 * G + G * 3 * G + G * Fp + Fp * OP) * esz
                    + (3 * G + G + Fp + OP) * 4)
    est = _chunk_bytes(TC) + 2 * weight_bytes + TB * G * 4 + 2 * TB * OP * 4
    vmem_limit = int(min(max(2 * est, 32 * 1024 * 1024), 112 * 1024 * 1024))

    kern = functools.partial(bigru_kernel,
                             seq_len=T, chunk_len=TC,
                             mask_tail=(Tp != T),
                             unroll=max(1, min(TC, 8)))

    out = pl.pallas_call(
        kern,
        out_shape=jax.ShapeDtypeStruct((Bp, OP), jnp.float32),
        grid=(ntiles, n_chunks),
        in_specs=[
            pl.BlockSpec((1, TC * TB, 2 * E), lambda i, c: (i, c, 0)),
            _const_spec((2 * E, 3 * G)),
            _const_spec((G, 3 * G)),
            _const_spec((1, 3 * G)),
            _const_spec((1, G)),
            _const_spec((G, Fp)),
            _const_spec((1, Fp)),
            _const_spec((Fp, OP)),
            _const_spec((1, OP)),
        ],
        out_specs=pl.BlockSpec((TB, OP), lambda i, c: (i, 0)),
        scratch_shapes=[pltpu.VMEM((TC * TB, 3 * G), jnp.float32),
                        pltpu.VMEM((TB, G), jnp.float32)],
        compiler_params=pltpu.CompilerParams(
            dimension_semantics=("parallel", "arbitrary"),
            vmem_limit_bytes=vmem_limit),
    )(emb2, wih_cat, whh_big, bgi, bhn, w1p, b1p, w2p, b2p)

    return out[:B, 0]                                  # .squeeze(1) -> (B,)


def init_params(key, vocab_size, embedding_dim, hidden_dim):
    ks = jax.random.split(key, 13)

    def u(k, shape, bound):
        return jax.random.uniform(k, shape, jnp.float32, -bound, bound)

    emb = jax.random.normal(ks[0], (vocab_size, embedding_dim), jnp.float32)
    emb = emb.at[0].set(0.0)                           # padding_idx=0 row is zero

    k_gru = 1.0 / np.sqrt(hidden_dim)
    k_fc1 = 1.0 / np.sqrt(2 * hidden_dim)
    k_fc2 = 1.0 / np.sqrt(hidden_dim)

    return {
        "embedding": emb,
        # GRU weights stored transposed: (in_dim, 3H), gate order r, z, n.
        "wih_f": u(ks[1], (embedding_dim, 3 * hidden_dim), k_gru),
        "whh_f": u(ks[2], (hidden_dim, 3 * hidden_dim), k_gru),
        "bih_f": u(ks[3], (1, 3 * hidden_dim), k_gru),
        "bhh_f": u(ks[4], (1, 3 * hidden_dim), k_gru),
        "wih_b": u(ks[5], (embedding_dim, 3 * hidden_dim), k_gru),
        "whh_b": u(ks[6], (hidden_dim, 3 * hidden_dim), k_gru),
        "bih_b": u(ks[7], (1, 3 * hidden_dim), k_gru),
        "bhh_b": u(ks[8], (1, 3 * hidden_dim), k_gru),
        "w1": u(ks[9], (2 * hidden_dim, hidden_dim), k_fc1),
        "b1": u(ks[10], (1, hidden_dim), k_fc1),
        "w2": u(ks[11], (hidden_dim, 1), k_fc2),
        "b2": u(ks[12], (1, 1), k_fc2),
    }


def bigru_reference(x, params):
    """Pure-JAX reference mirroring the PyTorch forward (eval-mode dropout)."""
    emb = jnp.take(params["embedding"], x, axis=0)     # (B, T, E)
    B, T, _ = emb.shape
    H = params["whh_f"].shape[0]

    def cell(x_t, h, wih, whh, bih, bhh):
        gi = x_t @ wih + bih
        gh = h @ whh + bhh
        r = jax.nn.sigmoid(gi[:, :H] + gh[:, :H])
        z = jax.nn.sigmoid(gi[:, H:2 * H] + gh[:, H:2 * H])
        n = jnp.tanh(gi[:, 2 * H:] + r * gh[:, 2 * H:])
        return (1.0 - z) * n + z * h

    h_f = jnp.zeros((B, H), jnp.float32)
    h_b = jnp.zeros((B, H), jnp.float32)
    for t in range(T):
        h_f = cell(emb[:, t], h_f, params["wih_f"], params["whh_f"],
                   params["bih_f"], params["bhh_f"])
        h_b = cell(emb[:, T - 1 - t], h_b, params["wih_b"], params["whh_b"],
                   params["bih_b"], params["bhh_b"])
    hcat = jnp.concatenate([h_f, h_b], axis=1)
    h1 = jnp.maximum(hcat @ params["w1"] + params["b1"], 0.0)
    return (h1 @ params["w2"] + params["b2"])[:, 0]


if __name__ == "__main__":
    vocab_size, embedding_dim, hidden_dim = 64, 32, 32
    dropout_rate = 0.3   # identity in inference; kept for signature fidelity
    B, T = 2, 8

    key = jax.random.PRNGKey(0)
    k_x, k_p = jax.random.split(key)
    x = jax.random.randint(k_x, (B, T), 0, vocab_size, dtype=jnp.int32)
    params = init_params(k_p, vocab_size, embedding_dim, hidden_dim)

    fwd = jax.jit(bigru_forward)
    out = jax.block_until_ready(fwd(x, params))

    ref = bigru_reference(x, params)
    assert out.shape == (B,), out.shape
    assert np.allclose(np.asarray(out), np.asarray(ref), atol=1e-3, rtol=1e-3), (out, ref)

    print("KERNEL_OK")
</pallas_src>

<mosaic_0001>
module attributes {stable_mosaic.version = 11 : i64} {
  func.func @bigru_kernel(%arg0: i32, %arg1: i32, %arg2: memref<1x64x64xf32, #tpu.memory_space<vmem>>, %arg3: memref<64x384xf32, #tpu.memory_space<vmem>>, %arg4: memref<128x384xf32, #tpu.memory_space<vmem>>, %arg5: memref<1x384xf32, #tpu.memory_space<vmem>>, %arg6: memref<1x128xf32, #tpu.memory_space<vmem>>, %arg7: memref<128x128xf32, #tpu.memory_space<vmem>>, %arg8: memref<1x128xf32, #tpu.memory_space<vmem>>, %arg9: memref<128x128xf32, #tpu.memory_space<vmem>>, %arg10: memref<1x128xf32, #tpu.memory_space<vmem>>, %arg11: memref<8x128xf32, #tpu.memory_space<vmem>>, %arg12: memref<64x384xf32, #tpu.memory_space<vmem>>, %arg13: memref<8x128xf32, #tpu.memory_space<vmem>>) attributes {dimension_semantics = [#tpu.dimension_semantics<parallel>, #tpu.dimension_semantics<arbitrary>], iteration_bounds = array<i64: 1, 1>, scalar_prefetch = 0 : i64, scratch_operands = 2 : i64, tpu.core_type = #tpu.core_type<tc>, window_params = [{transform_indices = @transform_0, window_bounds = array<i64: 1, 64, 64>}, {pipeline_mode = #tpu.pipeline_mode<synchronous>, transform_indices = @transform_1, window_bounds = array<i64: 64, 384>}, {pipeline_mode = #tpu.pipeline_mode<synchronous>, transform_indices = @transform_2, window_bounds = array<i64: 128, 384>}, {pipeline_mode = #tpu.pipeline_mode<synchronous>, transform_indices = @transform_3, window_bounds = array<i64: 1, 384>}, {pipeline_mode = #tpu.pipeline_mode<synchronous>, transform_indices = @transform_4, window_bounds = array<i64: 1, 128>}, {pipeline_mode = #tpu.pipeline_mode<synchronous>, transform_indices = @transform_5, window_bounds = array<i64: 128, 128>}, {pipeline_mode = #tpu.pipeline_mode<synchronous>, transform_indices = @transform_6, window_bounds = array<i64: 1, 128>}, {pipeline_mode = #tpu.pipeline_mode<synchronous>, transform_indices = @transform_7, window_bounds = array<i64: 128, 128>}, {pipeline_mode = #tpu.pipeline_mode<synchronous>, transform_indices = @transform_8, window_bounds = array<i64: 1, 128>}, {transform_indices = @transform_9, window_bounds = array<i64: 8, 128>}]} {
    %c0_i32 = arith.constant 0 : i32
    %0 = arith.cmpi eq, %arg1, %c0_i32 : i32
    %1 = arith.extui %0 : i1 to i32
    %c0_i32_0 = arith.constant 0 : i32
    %2 = arith.cmpi ne, %1, %c0_i32_0 : i32
    scf.if %2 {
      %cst_68 = arith.constant 0.000000e+00 : f32
      %276 = vector.broadcast %cst_68 : f32 to vector<8x128xf32>
      %c0_69 = arith.constant 0 : index
      %c0_70 = arith.constant 0 : index
      %277 = vector.load %arg13[%c0_69, %c0_70] : memref<8x128xf32, #tpu.memory_space<vmem>>, vector<8x128xf32>
      tpu.vector_store %arg13[%c0_69, %c0_70], %276 {strides = array<i32>} : memref<8x128xf32, #tpu.memory_space<vmem>>, vector<8x128xf32>,
    } else {
    }
    %c0 = arith.constant 0 : index
    %c0_1 = arith.constant 0 : index
    %c0_2 = arith.constant 0 : index
    %3 = vector.load %arg2[%c0, %c0_1, %c0_2] : memref<1x64x64xf32, #tpu.memory_space<vmem>>, vector<1x64x64xf32>
    %4 = vector.shape_cast %3 : vector<1x64x64xf32> to vector<64x64xf32>
    %c0_3 = arith.constant 0 : index
    %c0_4 = arith.constant 0 : index
    %5 = vector.load %arg3[%c0_3, %c0_4] : memref<64x384xf32, #tpu.memory_space<vmem>>, vector<64x384xf32>
    %cst = arith.constant dense<0.000000e+00> : vector<64x384xf32>
    %6 = tpu.matmul %4, %5, %cst {dimension_numbers = #tpu.dot_dimension_numbers<[1], [0], [0], [1], [0, 0, 1, 1], [], []>} : vector<64x64xf32>, vector<64x384xf32>, vector<64x384xf32> -> vector<64x384xf32>
    %c0_5 = arith.constant 0 : index
    %c0_6 = arith.constant 0 : index
    %7 = vector.load %arg5[%c0_5, %c0_6] : memref<1x384xf32, #tpu.memory_space<vmem>>, vector<1x384xf32>
    %8 = vector.broadcast %7 : vector<1x384xf32> to vector<64x384xf32>
    %9 = arith.addf %6, %8 : vector<64x384xf32>
    %c0_7 = arith.constant 0 : index
    %c0_8 = arith.constant 0 : index
    %10 = vector.load %arg12[%c0_7, %c0_8] : memref<64x384xf32, #tpu.memory_space<vmem>>, vector<64x384xf32>
    tpu.vector_store %arg12[%c0_7, %c0_8], %9 {strides = array<i32>} : memref<64x384xf32, #tpu.memory_space<vmem>>, vector<64x384xf32>,
    %c0_9 = arith.constant 0 : index
    %c0_10 = arith.constant 0 : index
    %11 = vector.load %arg4[%c0_9, %c0_10] : memref<128x384xf32, #tpu.memory_space<vmem>>, vector<128x384xf32>
    %c0_11 = arith.constant 0 : index
    %c0_12 = arith.constant 0 : index
    %12 = vector.load %arg6[%c0_11, %c0_12] : memref<1x128xf32, #tpu.memory_space<vmem>>, vector<1x128xf32>
    %13 = vector.shape_cast %12 : vector<1x128xf32> to vector<1x128xf32>
    %14 = vector.broadcast %13 : vector<1x128xf32> to vector<8x128xf32>
    %c0_13 = arith.constant 0 : index
    %c0_14 = arith.constant 0 : index
    %15 = vector.load %arg13[%c0_13, %c0_14] : memref<8x128xf32, #tpu.memory_space<vmem>>, vector<8x128xf32>
    %c0_i32_15 = arith.constant 0 : i32
    %c8_i32 = arith.constant 8 : i32
    %16 = arith.muli %c0_i32_15, %c8_i32 : i32
    %17 = tpu.assume_multiple %16, 8 : i32
    %18 = arith.index_cast %17 : i32 to index
    %c0_16 = arith.constant 0 : index
    %19 = vector.load %arg12[%18, %c0_16] : memref<64x384xf32, #tpu.memory_space<vmem>>, vector<8x384xf32>
    %cst_17 = arith.constant dense<0.000000e+00> : vector<8x384xf32>
    %20 = tpu.matmul %15, %11, %cst_17 {dimension_numbers = #tpu.dot_dimension_numbers<[1], [0], [0], [1], [0, 0, 1, 1], [], []>} : vector<8x128xf32>, vector<128x384xf32>, vector<8x384xf32> -> vector<8x384xf32>
    %21 = vector.extract_strided_slice %19 {offsets = [0, 0], sizes = [8, 128], strides = [1, 1]} : vector<8x384xf32> to vector<8x128xf32>
    %22 = vector.extract_strided_slice %20 {offsets = [0, 0], sizes = [8, 128], strides = [1, 1]} : vector<8x384xf32> to vector<8x128xf32>
    %23 = arith.addf %21, %22 : vector<8x128xf32>
    %24 = arith.negf %23 : vector<8x128xf32>
    %25 = math.exp %24 : vector<8x128xf32>
    %cst_18 = arith.constant 1.000000e+00 : f32
    %26 = vector.broadcast %cst_18 : f32 to vector<8x128xf32>
    %27 = arith.addf %26, %25 : vector<8x128xf32>
    %28 = arith.divf %26, %27 : vector<8x128xf32>
    %29 = vector.extract_strided_slice %19 {offsets = [0, 128], sizes = [8, 128], strides = [1, 1]} : vector<8x384xf32> to vector<8x128xf32>
    %30 = vector.extract_strided_slice %20 {offsets = [0, 128], sizes = [8, 128], strides = [1, 1]} : vector<8x384xf32> to vector<8x128xf32>
    %31 = arith.addf %29, %30 : vector<8x128xf32>
    %32 = arith.negf %31 : vector<8x128xf32>
    %33 = math.exp %32 : vector<8x128xf32>
    %cst_19 = arith.constant 1.000000e+00 : f32
    %34 = vector.broadcast %cst_19 : f32 to vector<8x128xf32>
    %35 = arith.addf %34, %33 : vector<8x128xf32>
    %36 = arith.divf %34, %35 : vector<8x128xf32>
    %37 = vector.extract_strided_slice %19 {offsets = [0, 256], sizes = [8, 128], strides = [1, 1]} : vector<8x384xf32> to vector<8x128xf32>
    %38 = vector.extract_strided_slice %20 {offsets = [0, 256], sizes = [8, 128], strides = [1, 1]} : vector<8x384xf32> to vector<8x128xf32>
    %39 = arith.addf %38, %14 : vector<8x128xf32>
    %40 = arith.mulf %28, %39 : vector<8x128xf32>
    %41 = arith.addf %37, %40 : vector<8x128xf32>
    %42 = math.tanh %41 : vector<8x128xf32>
    %cst_20 = arith.constant 1.000000e+00 : f32
    %43 = vector.broadcast %cst_20 : f32 to vector<8x128xf32>
    %44 = arith.subf %43, %36 : vector<8x128xf32>
    %45 = arith.mulf %44, %42 : vector<8x128xf32>
    %46 = arith.mulf %36, %15 : vector<8x128xf32>
    %47 = arith.addf %45, %46 : vector<8x128xf32>
    %c1_i32 = arith.constant 1 : i32
    %c8_i32_21 = arith.constant 8 : i32
    %48 = arith.muli %c1_i32, %c8_i32_21 : i32
    %49 = tpu.assume_multiple %48, 8 : i32
    %50 = arith.index_cast %49 : i32 to index
    %c0_22 = arith.constant 0 : index
    %51 = vector.load %arg12[%50, %c0_22] : memref<64x384xf32, #tpu.memory_space<vmem>>, vector<8x384xf32>
    %cst_23 = arith.constant dense<0.000000e+00> : vector<8x384xf32>
    %52 = tpu.matmul %47, %11, %cst_23 {dimension_numbers = #tpu.dot_dimension_numbers<[1], [0], [0], [1], [0, 0, 1, 1], [], []>} : vector<8x128xf32>, vector<128x384xf32>, vector<8x384xf32> -> vector<8x384xf32>
    %53 = vector.extract_strided_slice %51 {offsets = [0, 0], sizes = [8, 128], strides = [1, 1]} : vector<8x384xf32> to vector<8x128xf32>
    %54 = vector.extract_strided_slice %52 {offsets = [0, 0], sizes = [8, 128], strides = [1, 1]} : vector<8x384xf32> to vector<8x128xf32>
    %55 = arith.addf %53, %54 : vector<8x128xf32>
    %56 = arith.negf %55 : vector<8x128xf32>
    %57 = math.exp %56 : vector<8x128xf32>
    %cst_24 = arith.constant 1.000000e+00 : f32
    %58 = vector.broadcast %cst_24 : f32 to vector<8x128xf32>
    %59 = arith.addf %58, %57 : vector<8x128xf32>
    %60 = arith.divf %58, %59 : vector<8x128xf32>
    %61 = vector.extract_strided_slice %51 {offsets = [0, 128], sizes = [8, 128], strides = [1, 1]} : vector<8x384xf32> to vector<8x128xf32>
    %62 = vector.extract_strided_slice %52 {offsets = [0, 128], sizes = [8, 128], strides = [1, 1]} : vector<8x384xf32> to vector<8x128xf32>
    %63 = arith.addf %61, %62 : vector<8x128xf32>
    %64 = arith.negf %63 : vector<8x128xf32>
    %65 = math.exp %64 : vector<8x128xf32>
    %cst_25 = arith.constant 1.000000e+00 : f32
    %66 = vector.broadcast %cst_25 : f32 to vector<8x128xf32>
    %67 = arith.addf %66, %65 : vector<8x128xf32>
    %68 = arith.divf %66, %67 : vector<8x128xf32>
    %69 = vector.extract_strided_slice %51 {offsets = [0, 256], sizes = [8, 128], strides = [1, 1]} : vector<8x384xf32> to vector<8x128xf32>
    %70 = vector.extract_strided_slice %52 {offsets = [0, 256], sizes = [8, 128], strides = [1, 1]} : vector<8x384xf32> to vector<8x128xf32>
    %71 = arith.addf %70, %14 : vector<8x128xf32>
    %72 = arith.mulf %60, %71 : vector<8x128xf32>
    %73 = arith.addf %69, %72 : vector<8x128xf32>
    %74 = math.tanh %73 : vector<8x128xf32>
    %cst_26 = arith.constant 1.000000e+00 : f32
    %75 = vector.broadcast %cst_26 : f32 to vector<8x128xf32>
    %76 = arith.subf %75, %68 : vector<8x128xf32>
    %77 = arith.mulf %76, %74 : vector<8x128xf32>
    %78 = arith.mulf %68, %47 : vector<8x128xf32>
    %79 = arith.addf %77, %78 : vector<8x128xf32>
    %c2_i32 = arith.constant 2 : i32
    %c8_i32_27 = arith.constant 8 : i32
    %80 = arith.muli %c2_i32, %c8_i32_27 : i32
    %81 = tpu.assume_multiple %80, 8 : i32
    %82 = arith.index_cast %81 : i32 to index
    %c0_28 = arith.constant 0 : index
    %83 = vector.load %arg12[%82, %c0_28] : memref<64x384xf32, #tpu.memory_space<vmem>>, vector<8x384xf32>
    %cst_29 = arith.constant dense<0.000000e+00> : vector<8x384xf32>
    %84 = tpu.matmul %79, %11, %cst_29 {dimension_numbers = #tpu.dot_dimension_numbers<[1], [0], [0], [1], [0, 0, 1, 1], [], []>} : vector<8x128xf32>, vector<128x384xf32>, vector<8x384xf32> -> vector<8x384xf32>
    %85 = vector.extract_strided_slice %83 {offsets = [0, 0], sizes = [8, 128], strides = [1, 1]} : vector<8x384xf32> to vector<8x128xf32>
    %86 = vector.extract_strided_slice %84 {offsets = [0, 0], sizes = [8, 128], strides = [1, 1]} : vector<8x384xf32> to vector<8x128xf32>
    %87 = arith.addf %85, %86 : vector<8x128xf32>
    %88 = arith.negf %87 : vector<8x128xf32>
    %89 = math.exp %88 : vector<8x128xf32>
    %cst_30 = arith.constant 1.000000e+00 : f32
    %90 = vector.broadcast %cst_30 : f32 to vector<8x128xf32>
    %91 = arith.addf %90, %89 : vector<8x128xf32>
    %92 = arith.divf %90, %91 : vector<8x128xf32>
    %93 = vector.extract_strided_slice %83 {offsets = [0, 128], sizes = [8, 128], strides = [1, 1]} : vector<8x384xf32> to vector<8x128xf32>
    %94 = vector.extract_strided_slice %84 {offsets = [0, 128], sizes = [8, 128], strides = [1, 1]} : vector<8x384xf32> to vector<8x128xf32>
    %95 = arith.addf %93, %94 : vector<8x128xf32>
    %96 = arith.negf %95 : vector<8x128xf32>
    %97 = math.exp %96 : vector<8x128xf32>
    %cst_31 = arith.constant 1.000000e+00 : f32
    %98 = vector.broadcast %cst_31 : f32 to vector<8x128xf32>
    %99 = arith.addf %98, %97 : vector<8x128xf32>
    %100 = arith.divf %98, %99 : vector<8x128xf32>
    %101 = vector.extract_strided_slice %83 {offsets = [0, 256], sizes = [8, 128], strides = [1, 1]} : vector<8x384xf32> to vector<8x128xf32>
    %102 = vector.extract_strided_slice %84 {offsets = [0, 256], sizes = [8, 128], strides = [1, 1]} : vector<8x384xf32> to vector<8x128xf32>
    %103 = arith.addf %102, %14 : vector<8x128xf32>
    %104 = arith.mulf %92, %103 : vector<8x128xf32>
    %105 = arith.addf %101, %104 : vector<8x128xf32>
    %106 = math.tanh %105 : vector<8x128xf32>
    %cst_32 = arith.constant 1.000000e+00 : f32
    %107 = vector.broadcast %cst_32 : f32 to vector<8x128xf32>
    %108 = arith.subf %107, %100 : vector<8x128xf32>
    %109 = arith.mulf %108, %106 : vector<8x128xf32>
    %110 = arith.mulf %100, %79 : vector<8x128xf32>
    %111 = arith.addf %109, %110 : vector<8x128xf32>
    %c3_i32 = arith.constant 3 : i32
    %c8_i32_33 = arith.constant 8 : i32
    %112 = arith.muli %c3_i32, %c8_i32_33 : i32
    %113 = tpu.assume_multiple %112, 8 : i32
    %114 = arith.index_cast %113 : i32 to index
    %c0_34 = arith.constant 0 : index
    %115 = vector.load %arg12[%114, %c0_34] : memref<64x384xf32, #tpu.memory_space<vmem>>, vector<8x384xf32>
    %cst_35 = arith.constant dense<0.000000e+00> : vector<8x384xf32>
    %116 = tpu.matmul %111, %11, %cst_35 {dimension_numbers = #tpu.dot_dimension_numbers<[1], [0], [0], [1], [0, 0, 1, 1], [], []>} : vector<8x128xf32>, vector<128x384xf32>, vector<8x384xf32> -> vector<8x384xf32>
    %117 = vector.extract_strided_slice %115 {offsets = [0, 0], sizes = [8, 128], strides = [1, 1]} : vector<8x384xf32> to vector<8x128xf32>
    %118 = vector.extract_strided_slice %116 {offsets = [0, 0], sizes = [8, 128], strides = [1, 1]} : vector<8x384xf32> to vector<8x128xf32>
    %119 = arith.addf %117, %118 : vector<8x128xf32>
    %120 = arith.negf %119 : vector<8x128xf32>
    %121 = math.exp %120 : vector<8x128xf32>
    %cst_36 = arith.constant 1.000000e+00 : f32
    %122 = vector.broadcast %cst_36 : f32 to vector<8x128xf32>
    %123 = arith.addf %122, %121 : vector<8x128xf32>
    %124 = arith.divf %122, %123 : vector<8x128xf32>
    %125 = vector.extract_strided_slice %115 {offsets = [0, 128], sizes = [8, 128], strides = [1, 1]} : vector<8x384xf32> to vector<8x128xf32>
    %126 = vector.extract_strided_slice %116 {offsets = [0, 128], sizes = [8, 128], strides = [1, 1]} : vector<8x384xf32> to vector<8x128xf32>
    %127 = arith.addf %125, %126 : vector<8x128xf32>
    %128 = arith.negf %127 : vector<8x128xf32>
    %129 = math.exp %128 : vector<8x128xf32>
    %cst_37 = arith.constant 1.000000e+00 : f32
    %130 = vector.broadcast %cst_37 : f32 to vector<8x128xf32>
    %131 = arith.addf %130, %129 : vector<8x128xf32>
    %132 = arith.divf %130, %131 : vector<8x128xf32>
    %133 = vector.extract_strided_slice %115 {offsets = [0, 256], sizes = [8, 128], strides = [1, 1]} : vector<8x384xf32> to vector<8x128xf32>
    %134 = vector.extract_strided_slice %116 {offsets = [0, 256], sizes = [8, 128], strides = [1, 1]} : vector<8x384xf32> to vector<8x128xf32>
    %135 = arith.addf %134, %14 : vector<8x128xf32>
    %136 = arith.mulf %124, %135 : vector<8x128xf32>
    %137 = arith.addf %133, %136 : vector<8x128xf32>
    %138 = math.tanh %137 : vector<8x128xf32>
    %cst_38 = arith.constant 1.000000e+00 : f32
    %139 = vector.broadcast %cst_38 : f32 to vector<8x128xf32>
    %140 = arith.subf %139, %132 : vector<8x128xf32>
    %141 = arith.mulf %140, %138 : vector<8x128xf32>
    %142 = arith.mulf %132, %111 : vector<8x128xf32>
    %143 = arith.addf %141, %142 : vector<8x128xf32>
    %c4_i32 = arith.constant 4 : i32
    %c8_i32_39 = arith.constant 8 : i32
    %144 = arith.muli %c4_i32, %c8_i32_39 : i32
    %145 = tpu.assume_multiple %144, 8 : i32
    %146 = arith.index_cast %145 : i32 to index
    %c0_40 = arith.constant 0 : index
    %147 = vector.load %arg12[%146, %c0_40] : memref<64x384xf32, #tpu.memory_space<vmem>>, vector<8x384xf32>
    %cst_41 = arith.constant dense<0.000000e+00> : vector<8x384xf32>
    %148 = tpu.matmul %143, %11, %cst_41 {dimension_numbers = #tpu.dot_dimension_numbers<[1], [0], [0], [1], [0, 0, 1, 1], [], []>} : vector<8x128xf32>, vector<128x384xf32>, vector<8x384xf32> -> vector<8x384xf32>
    %149 = vector.extract_strided_slice %147 {offsets = [0, 0], sizes = [8, 128], strides = [1, 1]} : vector<8x384xf32> to vector<8x128xf32>
    %150 = vector.extract_strided_slice %148 {offsets = [0, 0], sizes = [8, 128], strides = [1, 1]} : vector<8x384xf32> to vector<8x128xf32>
    %151 = arith.addf %149, %150 : vector<8x128xf32>
    %152 = arith.negf %151 : vector<8x128xf32>
    %153 = math.exp %152 : vector<8x128xf32>
    %cst_42 = arith.constant 1.000000e+00 : f32
    %154 = vector.broadcast %cst_42 : f32 to vector<8x128xf32>
    %155 = arith.addf %154, %153 : vector<8x128xf32>
    %156 = arith.divf %154, %155 : vector<8x128xf32>
    %157 = vector.extract_strided_slice %147 {offsets = [0, 128], sizes = [8, 128], strides = [1, 1]} : vector<8x384xf32> to vector<8x128xf32>
    %158 = vector.extract_strided_slice %148 {offsets = [0, 128], sizes = [8, 128], strides = [1, 1]} : vector<8x384xf32> to vector<8x128xf32>
    %159 = arith.addf %157, %158 : vector<8x128xf32>
    %160 = arith.negf %159 : vector<8x128xf32>
    %161 = math.exp %160 : vector<8x128xf32>
    %cst_43 = arith.constant 1.000000e+00 : f32
    %162 = vector.broadcast %cst_43 : f32 to vector<8x128xf32>
    %163 = arith.addf %162, %161 : vector<8x128xf32>
    %164 = arith.divf %162, %163 : vector<8x128xf32>
    %165 = vector.extract_strided_slice %147 {offsets = [0, 256], sizes = [8, 128], strides = [1, 1]} : vector<8x384xf32> to vector<8x128xf32>
    %166 = vector.extract_strided_slice %148 {offsets = [0, 256], sizes = [8, 128], strides = [1, 1]} : vector<8x384xf32> to vector<8x128xf32>
    %167 = arith.addf %166, %14 : vector<8x128xf32>
    %168 = arith.mulf %156, %167 : vector<8x128xf32>
    %169 = arith.addf %165, %168 : vector<8x128xf32>
    %170 = math.tanh %169 : vector<8x128xf32>
    %cst_44 = arith.constant 1.000000e+00 : f32
    %171 = vector.broadcast %cst_44 : f32 to vector<8x128xf32>
    %172 = arith.subf %171, %164 : vector<8x128xf32>
    %173 = arith.mulf %172, %170 : vector<8x128xf32>
    %174 = arith.mulf %164, %143 : vector<8x128xf32>
    %175 = arith.addf %173, %174 : vector<8x128xf32>
    %c5_i32 = arith.constant 5 : i32
    %c8_i32_45 = arith.constant 8 : i32
    %176 = arith.muli %c5_i32, %c8_i32_45 : i32
    %177 = tpu.assume_multiple %176, 8 : i32
    %178 = arith.index_cast %177 : i32 to index
    %c0_46 = arith.constant 0 : index
    %179 = vector.load %arg12[%178, %c0_46] : memref<64x384xf32, #tpu.memory_space<vmem>>, vector<8x384xf32>
    %cst_47 = arith.constant dense<0.000000e+00> : vector<8x384xf32>
    %180 = tpu.matmul %175, %11, %cst_47 {dimension_numbers = #tpu.dot_dimension_numbers<[1], [0], [0], [1], [0, 0, 1, 1], [], []>} : vector<8x128xf32>, vector<128x384xf32>, vector<8x384xf32> -> vector<8x384xf32>
    %181 = vector.extract_strided_slice %179 {offsets = [0, 0], sizes = [8, 128], strides = [1, 1]} : vector<8x384xf32> to vector<8x128xf32>
    %182 = vector.extract_strided_slice %180 {offsets = [0, 0], sizes = [8, 128], strides = [1, 1]} : vector<8x384xf32> to vector<8x128xf32>
    %183 = arith.addf %181, %182 : vector<8x128xf32>
    %184 = arith.negf %183 : vector<8x128xf32>
    %185 = math.exp %184 : vector<8x128xf32>
    %cst_48 = arith.constant 1.000000e+00 : f32
    %186 = vector.broadcast %cst_48 : f32 to vector<8x128xf32>
    %187 = arith.addf %186, %185 : vector<8x128xf32>
    %188 = arith.divf %186, %187 : vector<8x128xf32>
    %189 = vector.extract_strided_slice %179 {offsets = [0, 128], sizes = [8, 128], strides = [1, 1]} : vector<8x384xf32> to vector<8x128xf32>
    %190 = vector.extract_strided_slice %180 {offsets = [0, 128], sizes = [8, 128], strides = [1, 1]} : vector<8x384xf32> to vector<8x128xf32>
    %191 = arith.addf %189, %190 : vector<8x128xf32>
    %192 = arith.negf %191 : vector<8x128xf32>
    %193 = math.exp %192 : vector<8x128xf32>
    %cst_49 = arith.constant 1.000000e+00 : f32
    %194 = vector.broadcast %cst_49 : f32 to vector<8x128xf32>
    %195 = arith.addf %194, %193 : vector<8x128xf32>
    %196 = arith.divf %194, %195 : vector<8x128xf32>
    %197 = vector.extract_strided_slice %179 {offsets = [0, 256], sizes = [8, 128], strides = [1, 1]} : vector<8x384xf32> to vector<8x128xf32>
    %198 = vector.extract_strided_slice %180 {offsets = [0, 256], sizes = [8, 128], strides = [1, 1]} : vector<8x384xf32> to vector<8x128xf32>
    %199 = arith.addf %198, %14 : vector<8x128xf32>
    %200 = arith.mulf %188, %199 : vector<8x128xf32>
    %201 = arith.addf %197, %200 : vector<8x128xf32>
    %202 = math.tanh %201 : vector<8x128xf32>
    %cst_50 = arith.constant 1.000000e+00 : f32
    %203 = vector.broadcast %cst_50 : f32 to vector<8x128xf32>
    %204 = arith.subf %203, %196 : vector<8x128xf32>
    %205 = arith.mulf %204, %202 : vector<8x128xf32>
    %206 = arith.mulf %196, %175 : vector<8x128xf32>
    %207 = arith.addf %205, %206 : vector<8x128xf32>
    %c6_i32 = arith.constant 6 : i32
    %c8_i32_51 = arith.constant 8 : i32
    %208 = arith.muli %c6_i32, %c8_i32_51 : i32
    %209 = tpu.assume_multiple %208, 8 : i32
    %210 = arith.index_cast %209 : i32 to index
    %c0_52 = arith.constant 0 : index
    %211 = vector.load %arg12[%210, %c0_52] : memref<64x384xf32, #tpu.memory_space<vmem>>, vector<8x384xf32>
    %cst_53 = arith.constant dense<0.000000e+00> : vector<8x384xf32>
    %212 = tpu.matmul %207, %11, %cst_53 {dimension_numbers = #tpu.dot_dimension_numbers<[1], [0], [0], [1], [0, 0, 1, 1], [], []>} : vector<8x128xf32>, vector<128x384xf32>, vector<8x384xf32> -> vector<8x384xf32>
    %213 = vector.extract_strided_slice %211 {offsets = [0, 0], sizes = [8, 128], strides = [1, 1]} : vector<8x384xf32> to vector<8x128xf32>
    %214 = vector.extract_strided_slice %212 {offsets = [0, 0], sizes = [8, 128], strides = [1, 1]} : vector<8x384xf32> to vector<8x128xf32>
    %215 = arith.addf %213, %214 : vector<8x128xf32>
    %216 = arith.negf %215 : vector<8x128xf32>
    %217 = math.exp %216 : vector<8x128xf32>
    %cst_54 = arith.constant 1.000000e+00 : f32
    %218 = vector.broadcast %cst_54 : f32 to vector<8x128xf32>
    %219 = arith.addf %218, %217 : vector<8x128xf32>
    %220 = arith.divf %218, %219 : vector<8x128xf32>
    %221 = vector.extract_strided_slice %211 {offsets = [0, 128], sizes = [8, 128], strides = [1, 1]} : vector<8x384xf32> to vector<8x128xf32>
    %222 = vector.extract_strided_slice %212 {offsets = [0, 128], sizes = [8, 128], strides = [1, 1]} : vector<8x384xf32> to vector<8x128xf32>
    %223 = arith.addf %221, %222 : vector<8x128xf32>
    %224 = arith.negf %223 : vector<8x128xf32>
    %225 = math.exp %224 : vector<8x128xf32>
    %cst_55 = arith.constant 1.000000e+00 : f32
    %226 = vector.broadcast %cst_55 : f32 to vector<8x128xf32>
    %227 = arith.addf %226, %225 : vector<8x128xf32>
    %228 = arith.divf %226, %227 : vector<8x128xf32>
    %229 = vector.extract_strided_slice %211 {offsets = [0, 256], sizes = [8, 128], strides = [1, 1]} : vector<8x384xf32> to vector<8x128xf32>
    %230 = vector.extract_strided_slice %212 {offsets = [0, 256], sizes = [8, 128], strides = [1, 1]} : vector<8x384xf32> to vector<8x128xf32>
    %231 = arith.addf %230, %14 : vector<8x128xf32>
    %232 = arith.mulf %220, %231 : vector<8x128xf32>
    %233 = arith.addf %229, %232 : vector<8x128xf32>
    %234 = math.tanh %233 : vector<8x128xf32>
    %cst_56 = arith.constant 1.000000e+00 : f32
    %235 = vector.broadcast %cst_56 : f32 to vector<8x128xf32>
    %236 = arith.subf %235, %228 : vector<8x128xf32>
    %237 = arith.mulf %236, %234 : vector<8x128xf32>
    %238 = arith.mulf %228, %207 : vector<8x128xf32>
    %239 = arith.addf %237, %238 : vector<8x128xf32>
    %c7_i32 = arith.constant 7 : i32
    %c8_i32_57 = arith.constant 8 : i32
    %240 = arith.muli %c7_i32, %c8_i32_57 : i32
    %241 = tpu.assume_multiple %240, 8 : i32
    %242 = arith.index_cast %241 : i32 to index
    %c0_58 = arith.constant 0 : index
    %243 = vector.load %arg12[%242, %c0_58] : memref<64x384xf32, #tpu.memory_space<vmem>>, vector<8x384xf32>
    %cst_59 = arith.constant dense<0.000000e+00> : vector<8x384xf32>
    %244 = tpu.matmul %239, %11, %cst_59 {dimension_numbers = #tpu.dot_dimension_numbers<[1], [0], [0], [1], [0, 0, 1, 1], [], []>} : vector<8x128xf32>, vector<128x384xf32>, vector<8x384xf32> -> vector<8x384xf32>
    %245 = vector.extract_strided_slice %243 {offsets = [0, 0], sizes = [8, 128], strides = [1, 1]} : vector<8x384xf32> to vector<8x128xf32>
    %246 = vector.extract_strided_slice %244 {offsets = [0, 0], sizes = [8, 128], strides = [1, 1]} : vector<8x384xf32> to vector<8x128xf32>
    %247 = arith.addf %245, %246 : vector<8x128xf32>
    %248 = arith.negf %247 : vector<8x128xf32>
    %249 = math.exp %248 : vector<8x128xf32>
    %cst_60 = arith.constant 1.000000e+00 : f32
    %250 = vector.broadcast %cst_60 : f32 to vector<8x128xf32>
    %251 = arith.addf %250, %249 : vector<8x128xf32>
    %252 = arith.divf %250, %251 : vector<8x128xf32>
    %253 = vector.extract_strided_slice %243 {offsets = [0, 128], sizes = [8, 128], strides = [1, 1]} : vector<8x384xf32> to vector<8x128xf32>
    %254 = vector.extract_strided_slice %244 {offsets = [0, 128], sizes = [8, 128], strides = [1, 1]} : vector<8x384xf32> to vector<8x128xf32>
    %255 = arith.addf %253, %254 : vector<8x128xf32>
    %256 = arith.negf %255 : vector<8x128xf32>
    %257 = math.exp %256 : vector<8x128xf32>
    %cst_61 = arith.constant 1.000000e+00 : f32
    %258 = vector.broadcast %cst_61 : f32 to vector<8x128xf32>
    %259 = arith.addf %258, %257 : vector<8x128xf32>
    %260 = arith.divf %258, %259 : vector<8x128xf32>
    %261 = vector.extract_strided_slice %243 {offsets = [0, 256], sizes = [8, 128], strides = [1, 1]} : vector<8x384xf32> to vector<8x128xf32>
    %262 = vector.extract_strided_slice %244 {offsets = [0, 256], sizes = [8, 128], strides = [1, 1]} : vector<8x384xf32> to vector<8x128xf32>
    %263 = arith.addf %262, %14 : vector<8x128xf32>
    %264 = arith.mulf %252, %263 : vector<8x128xf32>
    %265 = arith.addf %261, %264 : vector<8x128xf32>
    %266 = math.tanh %265 : vector<8x128xf32>
    %cst_62 = arith.constant 1.000000e+00 : f32
    %267 = vector.broadcast %cst_62 : f32 to vector<8x128xf32>
    %268 = arith.subf %267, %260 : vector<8x128xf32>
    %269 = arith.mulf %268, %266 : vector<8x128xf32>
    %270 = arith.mulf %260, %239 : vector<8x128xf32>
    %271 = arith.addf %269, %270 : vector<8x128xf32>
    %c8_i32_63 = arith.constant 8 : i32
    %c0_64 = arith.constant 0 : index
    %c0_65 = arith.constant 0 : index
    %272 = vector.load %arg13[%c0_64, %c0_65] : memref<8x128xf32, #tpu.memory_space<vmem>>, vector<8x128xf32>
    tpu.vector_store %arg13[%c0_64, %c0_65], %271 {strides = array<i32>} : memref<8x128xf32, #tpu.memory_space<vmem>>, vector<8x128xf32>,
    %c0_i32_66 = arith.constant 0 : i32
    %273 = arith.cmpi eq, %arg1, %c0_i32_66 : i32
    %274 = arith.extui %273 : i1 to i32
    %c0_i32_67 = arith.constant 0 : i32
    %275 = arith.cmpi ne, %274, %c0_i32_67 : i32
    scf.if %275 {
      %c0_68 = arith.constant 0 : index
      %c0_69 = arith.constant 0 : index
      %276 = vector.load %arg7[%c0_68, %c0_69] : memref<128x128xf32, #tpu.memory_space<vmem>>, vector<128x128xf32>
      %cst_70 = arith.constant dense<0.000000e+00> : vector<8x128xf32>
      %277 = tpu.matmul %271, %276, %cst_70 {dimension_numbers = #tpu.dot_dimension_numbers<[1], [0], [0], [1], [0, 0, 1, 1], [], []>} : vector<8x128xf32>, vector<128x128xf32>, vector<8x128xf32> -> vector<8x128xf32>
      %c0_71 = arith.constant 0 : index
      %c0_72 = arith.constant 0 : index
      %278 = vector.load %arg8[%c0_71, %c0_72] : memref<1x128xf32, #tpu.memory_space<vmem>>, vector<1x128xf32>
      %279 = vector.broadcast %278 : vector<1x128xf32> to vector<8x128xf32>
      %280 = arith.addf %277, %279 : vector<8x128xf32>
      %cst_73 = arith.constant 0.000000e+00 : f32
      %281 = vector.broadcast %cst_73 : f32 to vector<8x128xf32>
      %282 = arith.maximumf %280, %281 : vector<8x128xf32>
      %c0_74 = arith.constant 0 : index
      %c0_75 = arith.constant 0 : index
      %283 = vector.load %arg9[%c0_74, %c0_75] : memref<128x128xf32, #tpu.memory_space<vmem>>, vector<128x128xf32>
      %cst_76 = arith.constant dense<0.000000e+00> : vector<8x128xf32>
      %284 = tpu.matmul %282, %283, %cst_76 {dimension_numbers = #tpu.dot_dimension_numbers<[1], [0], [0], [1], [0, 0, 1, 1], [], []>} : vector<8x128xf32>, vector<128x128xf32>, vector<8x128xf32> -> vector<8x128xf32>
      %c0_77 = arith.constant 0 : index
      %c0_78 = arith.constant 0 : index
      %285 = vector.load %arg10[%c0_77, %c0_78] : memref<1x128xf32, #tpu.memory_space<vmem>>, vector<1x128xf32>
      %286 = vector.broadcast %285 : vector<1x128xf32> to vector<8x128xf32>
      %287 = arith.addf %284, %286 : vector<8x128xf32>
      %c0_79 = arith.constant 0 : index
      %c0_80 = arith.constant 0 : index
      %288 = vector.load %arg11[%c0_79, %c0_80] : memref<8x128xf32, #tpu.memory_space<vmem>>, vector<8x128xf32>
      tpu.vector_store %arg11[%c0_79, %c0_80], %287 {strides = array<i32>} : memref<8x128xf32, #tpu.memory_space<vmem>>, vector<8x128xf32>,
    } else {
    }
    return
  }
  func.func @transform_0(%arg0: i32, %arg1: i32) -> (i32, i32, i32) {
    %c0_i32 = arith.constant 0 : i32
    %c0_i32_0 = arith.constant 0 : i32
    return %arg0, %arg1, %c0_i32 : i32, i32, i32
  }
  func.func @transform_1(%arg0: i32, %arg1: i32) -> (i32, i32) {
    %c0_i32 = arith.constant 0 : i32
    %c0_i32_0 = arith.constant 0 : i32
    %c0_i32_1 = arith.constant 0 : i32
    return %c0_i32, %c0_i32_0 : i32, i32
  }
  func.func @transform_2(%arg0: i32, %arg1: i32) -> (i32, i32) {
    %c0_i32 = arith.constant 0 : i32
    %c0_i32_0 = arith.constant 0 : i32
    %c0_i32_1 = arith.constant 0 : i32
    return %c0_i32, %c0_i32_0 : i32, i32
  }
  func.func @transform_3(%arg0: i32, %arg1: i32) -> (i32, i32) {
    %c0_i32 = arith.constant 0 : i32
    %c0_i32_0 = arith.constant 0 : i32
    %c0_i32_1 = arith.constant 0 : i32
    return %c0_i32, %c0_i32_0 : i32, i32
  }
  func.func @transform_4(%arg0: i32, %arg1: i32) -> (i32, i32) {
    %c0_i32 = arith.constant 0 : i32
    %c0_i32_0 = arith.constant 0 : i32
    %c0_i32_1 = arith.constant 0 : i32
    return %c0_i32, %c0_i32_0 : i32, i32
  }
  func.func @transform_5(%arg0: i32, %arg1: i32) -> (i32, i32) {
    %c0_i32 = arith.constant 0 : i32
    %c0_i32_0 = arith.constant 0 : i32
    %c0_i32_1 = arith.constant 0 : i32
    return %c0_i32, %c0_i32_0 : i32, i32
  }
  func.func @transform_6(%arg0: i32, %arg1: i32) -> (i32, i32) {
    %c0_i32 = arith.constant 0 : i32
    %c0_i32_0 = arith.constant 0 : i32
    %c0_i32_1 = arith.constant 0 : i32
    return %c0_i32, %c0_i32_0 : i32, i32
  }
  func.func @transform_7(%arg0: i32, %arg1: i32) -> (i32, i32) {
    %c0_i32 = arith.constant 0 : i32
    %c0_i32_0 = arith.constant 0 : i32
    %c0_i32_1 = arith.constant 0 : i32
    return %c0_i32, %c0_i32_0 : i32, i32
  }
  func.func @transform_8(%arg0: i32, %arg1: i32) -> (i32, i32) {
    %c0_i32 = arith.constant 0 : i32
    %c0_i32_0 = arith.constant 0 : i32
    %c0_i32_1 = arith.constant 0 : i32
    return %c0_i32, %c0_i32_0 : i32, i32
  }
  func.func @transform_9(%arg0: i32, %arg1: i32) -> (i32, i32) {
    %c0_i32 = arith.constant 0 : i32
    %c0_i32_0 = arith.constant 0 : i32
    return %arg0, %c0_i32 : i32, i32
  }
}

</mosaic_0001>

<bundles_post_ra>
// kernel: bigru_forward.1
= control target key start
LH: loop header
LB: loop body
LE: loop exit
PB: predicated region body
PF: predicated region fallthrough
CT: control target
= control target key end

     0   :  { %v4174_v3 = vmov 0.0   ;;  %vm86_vm0 = vcmask 523264   ;;  %vm2695_vm1 = vmmov 0   ;;  %s4164_s1 = inlined_call_operand.vmem [shape: f32[64,384], index: 1, kind: input, shape index: {}]   ;;  %s4165_s0 = inlined_call_operand.vmem [shape: f32[1,64,64], index: 0, kind: input, shape index: {}]   ;;  %s4166_s2 = inlined_call_operand.vmem [shape: f32[128,384], index: 2, kind: input, shape index: {}]   ;;  %s4167_s3 = inlined_call_operand.vmem [shape: f32[1,384], index: 3, kind: input, shape index: {}]   ;;  %s4168_s4 = inlined_call_operand.vmem [shape: f32[1,128], index: 4, kind: input, shape index: {}]   ;;  %s4169_s5 = inlined_call_operand.vmem [shape: f32[128,128], index: 5, kind: input, shape index: {}]   ;;  %s4170_s7 = inlined_call_operand.vmem [shape: f32[128,128], index: 7, kind: input, shape index: {}]   ;;  %s4171_s6 = inlined_call_operand.vmem [shape: f32[1,128], index: 6, kind: input, shape index: {}]   ;;  %s4172_s8 = inlined_call_operand.vmem [shape: f32[1,128], index: 8, kind: input, shape index: {}]   ;;  %s4173_s9 = inlined_call_operand.vmem [shape: f32[8,128], index: 9, kind: output, shape index: {}]  }
   0x1   :  { %v67_v0 = vld [vmem:[%s4164_s1 + $0xb0] sm:$0xff]  ;;  %v66_v1 = vld [vmem:[%s4164_s1 + $0xa8] sm:$0xff]  ;;  %v64_v2 = vld [vmem:[%s4164_s1 + $0x98] sm:$0xff]  ;;  %175 = vmatprep.mubr.f32.mxu0 %v4174_v3 }
   0x2   :  { %127 = vmatprep.subr.mxu0 %v67_v0  ;;  %v63_v4 = vld [vmem:[%s4164_s1 + $0x90] sm:$0xff]  ;;  %v61_v5 = vld [vmem:[%s4164_s1 + $0x80] sm:$0xff]  ;;  %v60_v6 = vld [vmem:[%s4164_s1 + $0x78] sm:$0xff] }
   0x3   :  { %128 = vmatpush1.msra.mxu0 %v66_v1  ;;  %v58_v7 = vld [vmem:[%s4164_s1 + $0x68] sm:$0xff]  ;;  %v57_v8 = vld [vmem:[%s4164_s1 + $0x60] sm:$0xff]  ;;  %v55_v10 = vld [vmem:[%s4164_s1 + $0x50] sm:$0xff] }
   0x4   :  { %129 = vmatprep.subr.mxu0 %v64_v2  ;;  %v37_v9 = vld [vmem:[%s4165_s0] sm:$0xff]  ;;  %v54_v11 = vld [vmem:[%s4164_s1 + $0x48] sm:$0xff]  ;;  %v52_v12 = vld [vmem:[%s4164_s1 + $0x38] sm:$0xff] }
   0x5   :  { %130 = vmatpush1.msra.mxu0 %v63_v4  ;;  %2201 = vmatprep.mubr.msk.f32.mxu1 %vm86_vm0, %v37_v9  ;;  %v51_v13 = vld [vmem:[%s4164_s1 + $0x30] sm:$0xff]  ;;  %v49_v14 = vld [vmem:[%s4164_s1 + $0x20] sm:$0xff]  ;;  %v48_v15 = vld [vmem:[%s4164_s1 + $0x18] sm:$0xff] }
   0x6   :  { %131 = vmatprep.subr.mxu0 %v61_v5  ;;  %v68_v16 = vld [vmem:[%s4164_s1 + $0xb8] sm:$0xff]  ;;  %v46_v17 = vld [vmem:[%s4164_s1 + $0x8] sm:$0xff]  ;;  %v45_v18 = vld [vmem:[%s4164_s1] sm:$0xff] }
   0x7   :  { %132 = vmatpush1.msra.mxu0 %v60_v6  ;;  %2185 = vmatprep.subr.mxu1 %v68_v16  ;;  %v65_v19 = vld [vmem:[%s4164_s1 + $0xa0] sm:$0xff]  ;;  %v2808_v20 = vld [vmem:[%s4166_s2 + $0x170] sm:$0xff]  ;;  %v62_v21 = vld [vmem:[%s4164_s1 + $0x88] sm:$0xff] }
   0x8   :  { %133 = vmatprep.subr.mxu0 %v58_v7  ;;  %2186 = vmatpush3.msra.mxu1 %v68_v16  ;;  %4192 = vst [vmem:[#allocation4_spill] sm:$0xff] %v2808_v20  ;;  %v2816_v22 = vld [vmem:[%s4166_s2 + $0x168] sm:$0xff]  ;;  %v2821_v23 = vld [vmem:[%s4166_s2 + $0x158] sm:$0xff]  ;;  %v2828_v24 = vld [vmem:[%s4166_s2 + $0x150] sm:$0xff] }
   0x9   :  { %134 = vmatpush1.msra.mxu0 %v57_v8  ;;  %2187 = vmatprep.subr.mxu1 %v65_v19  ;;  %v59_v25 = vld [vmem:[%s4164_s1 + $0x70] sm:$0xff]  ;;  %v2838_v26 = vld [vmem:[%s4165_s0 + $0x8] sm:$0xff]  ;;  %v2843_v27 = vld [vmem:[%s4166_s2 + $0x140] sm:$0xff] }
   0xa   :  { %135 = vmatprep.subr.mxu0 %v55_v10  ;;  %2188 = vmatpush3.msra.mxu1 %v65_v19  ;;  %v2849_v28 = vld [vmem:[%s4166_s2 + $0x138] sm:$0xff]  ;;  %v2855_v29 = vld [vmem:[%s4166_s2 + $0x128] sm:$0xff]  ;;  %v2863_v30 = vld [vmem:[%s4166_s2 + $0x120] sm:$0xff] }
   0xb   :  { %136 = vmatpush1.msra.mxu0 %v54_v11  ;;  %2189 = vmatprep.subr.mxu1 %v62_v21  ;;  %v56_v31 = vld [vmem:[%s4164_s1 + $0x58] sm:$0xff]  ;;  %v2873_v32 = vld [vmem:[%s4165_s0 + $0x10] sm:$0xff]  ;;  %v2884_v34 = vld [vmem:[%s4166_s2 + $0x108] sm:$0xff] }
   0xc   :  { %137 = vmatprep.subr.mxu0 %v52_v12  ;;  %2190 = vmatpush3.msra.mxu1 %v62_v21  ;;  %v2878_v33 = vld [vmem:[%s4166_s2 + $0x110] sm:$0xff]  ;;  %v2890_v35 = vld [vmem:[%s4166_s2 + $0xf8] sm:$0xff]  ;;  %v53_v37 = vld [vmem:[%s4164_s1 + $0x40] sm:$0xff] }
   0xd   :  { %138 = vmatpush1.msra.mxu0 %v51_v13  ;;  %2191 = vmatprep.subr.mxu1 %v59_v25  ;;  %v2898_v36 = vld [vmem:[%s4166_s2 + $0xf0] sm:$0xff]  ;;  %v2908_v38 = vld [vmem:[%s4165_s0 + $0x18] sm:$0xff]  ;;  %v2913_v39 = vld [vmem:[%s4166_s2 + $0xe0] sm:$0xff] }
   0xe   :  { %139 = vmatprep.subr.mxu0 %v49_v14  ;;  %2192 = vmatpush3.msra.mxu1 %v59_v25  ;;  %v2919_v40 = vld [vmem:[%s4166_s2 + $0xd8] sm:$0xff]  ;;  %v2925_v41 = vld [vmem:[%s4166_s2 + $0xc8] sm:$0xff]  ;;  %v2933_v42 = vld [vmem:[%s4166_s2 + $0xc0] sm:$0xff] }
   0xf   :  { %140 = vmatpush1.msra.mxu0 %v48_v15  ;;  %2193 = vmatprep.subr.mxu1 %v56_v31  ;;  %v50_v43 = vld [vmem:[%s4164_s1 + $0x28] sm:$0xff]  ;;  %v2943_v44 = vld [vmem:[%s4165_s0 + $0x20] sm:$0xff]  ;;  %v2948_v45 = vld [vmem:[%s4166_s2 + $0xb0] sm:$0xff] }
  0x10   :  { %141 = vmatprep.subr.mxu0 %v46_v17  ;;  %2194 = vmatpush3.msra.mxu1 %v56_v31  ;;  %v2954_v46 = vld [vmem:[%s4166_s2 + $0xa8] sm:$0xff]  ;;  %v2960_v47 = vld [vmem:[%s4166_s2 + $0x98] sm:$0xff]  ;;  %v2968_v48 = vld [vmem:[%s4166_s2 + $0x90] sm:$0xff] }
  0x11   :  { %142 = vmatpush1.msra.mxu0 %v45_v18  ;;  %2195 = vmatprep.subr.mxu1 %v53_v37  ;;  %v47_v49 = vld [vmem:[%s4164_s1 + $0x10] sm:$0xff]  ;;  %v2978_v50 = vld [vmem:[%s4165_s0 + $0x28] sm:$0xff]  ;;  %v2983_v51 = vld [vmem:[%s4166_s2 + $0x80] sm:$0xff]  ;;  %v71_v18 = vlaneseq }
  0x12   :  { %1964 = vmatmul.mubr.msk.f32.vlgmr.msra.gmra.mxu0 %vm86_vm0, %v37_v9  ;;  %415 = vmatprep.subr.mxu0 %v2808_v20  ;;  %v2989_v52 = vld [vmem:[%s4166_s2 + $0x78] sm:$0xff]  ;;  %v2995_v53 = vld [vmem:[%s4166_s2 + $0x68] sm:$0xff]  ;;  %v3003_v54 = vld [vmem:[%s4166_s2 + $0x60] sm:$0xff] }
  0x13   :  { %416 = vmatpush1.msra.mxu0 %v2816_v22  ;;  %181 = vmatprep.mubr.f32.mxu0 %v4174_v3  ;;  %v43_v55 = vld [vmem:[%s4165_s0 + $0x30] sm:$0xff]  ;;  %v3019_v57 = vld [vmem:[%s4166_s2 + $0x48] sm:$0xff]  ;;  %v3025_v58 = vld [vmem:[%s4166_s2 + $0x38] sm:$0xff]  ;;  %v72_v19 = vshrl.u32 %v71_v18, 7 }
  0x14   :  { %417 = vmatprep.subr.mxu0 %v2821_v23  ;;  %2196 = vmatpush3.msra.mxu1 %v53_v37  ;;  %v3013_v56 = vld [vmem:[%s4166_s2 + $0x50] sm:$0xff]  ;;  %v3038_v60 = vld [vmem:[%s4166_s2 + $0x178] sm:$0xff]  ;;  %v3048_v62 = vld [vmem:[%s4166_s2 + $0x20] sm:$0xff] }
  0x15   :  { %418 = vmatpush1.msra.mxu0 %v2828_v24  ;;  %2197 = vmatprep.subr.mxu1 %v50_v43  ;;  %v3033_v59 = vld [vmem:[%s4166_s2 + $0x30] sm:$0xff]  ;;  %v44_v61 = vld [vmem:[%s4165_s0 + $0x38] sm:$0xff]  ;;  %v3062_v0 = vld [vmem:[%s4166_s2 + $0x8] sm:$0xff]  ;;  %v73_v21 = vsub.s32 0, %v72_v19  ;;  %v77_v31 = vsub.s32 1, %v72_v19 }
  0x16   :  { %1965 = vmatmul.mubr.msk.f32.gmra.mxu0 %vm86_vm0, %v2838_v26  ;;  %419 = vmatprep.subr.mxu0 %v2843_v27  ;;  %v3054_v63 = vld [vmem:[%s4166_s2 + $0x18] sm:$0xff]  ;;  %4194 = vst [vmem:[#allocation6_spill] sm:$0xff] %v3062_v0  ;;  %v3070_v1 = vld [vmem:[%s4166_s2] sm:$0xff]  ;;  %v3084_v4 = vld [vmem:[%s4166_s2 + $0x148] sm:$0xff] }
  0x17   :  { %420 = vmatpush1.msra.mxu0 %v2849_v28  ;;  %187 = vmatprep.mubr.f32.mxu0 %v4174_v3  ;;  %4193 = vst [vmem:[#allocation5_spill] sm:$0xff] %v3054_v63  ;;  %4195 = vst [vmem:[#allocation7_spill] sm:$0xff] %v3070_v1  ;;  %v3075_v2 = vld [vmem:[%s4166_s2 + $0x160] sm:$0xff]  ;;  %v3093_v5 = vld [vmem:[%s4166_s2 + $0x130] sm:$0xff] }
  0x18   :  { %421 = vmatprep.subr.mxu0 %v2855_v29  ;;  %2198 = vmatpush3.msra.mxu1 %v50_v43  ;;  %v3102_v6 = vld [vmem:[%s4166_s2 + $0x118] sm:$0xff]  ;;  %v3113_v7 = vld [vmem:[%s4166_s2 + $0x100] sm:$0xff]  ;;  %v3122_v8 = vld [vmem:[%s4166_s2 + $0xe8] sm:$0xff] }
  0x19   :  { %422 = vmatpush1.msra.mxu0 %v2863_v30  ;;  %2199 = vmatprep.subr.mxu1 %v47_v49  ;;  %v3132_v9 = vld [vmem:[%s4166_s2 + $0xd0] sm:$0xff]  ;;  %v3141_v10 = vld [vmem:[%s4166_s2 + $0xb8] sm:$0xff]  ;;  %v3151_v11 = vld [vmem:[%s4166_s2 + $0xa0] sm:$0xff] }
  0x1a   :  { %1966 = vmatmul.mubr.msk.f32.gmra.mxu0 %vm86_vm0, %v2873_v32  ;;  %423 = vmatprep.subr.mxu0 %v2878_v33  ;;  %v3160_v12 = vld [vmem:[%s4166_s2 + $0x88] sm:$0xff]  ;;  %v3169_v13 = vld [vmem:[%s4166_s2 + $0x70] sm:$0xff]  ;;  %v3178_v14 = vld [vmem:[%s4166_s2 + $0x58] sm:$0xff] }
  0x1b   :  { %424 = vmatpush1.msra.mxu0 %v2884_v34  ;;  %193 = vmatprep.mubr.f32.mxu0 %v4174_v3  ;;  %v3187_v15 = vld [vmem:[%s4166_s2 + $0x40] sm:$0xff]  ;;  %v3196_v16 = vld [vmem:[%s4166_s2 + $0x28] sm:$0xff]  ;;  %v3205_v17 = vld [vmem:[%s4166_s2 + $0x10] sm:$0xff] }
  0x1c   :  { %425 = vmatprep.subr.mxu0 %v2890_v35  ;;  %2200 = vmatpush3.msra.mxu1 %v47_v49  ;;  %4196 = vst [vmem:[#allocation8_spill] sm:$0xff] %v3196_v16  ;;  %4197 = vst [vmem:[#allocation9_spill] sm:$0xff] %v3205_v17  ;;  %v69_v25 = vld [vmem:[%s4167_s3] sm:$0x7] }
  0x1d   :  { %426 = vmatpush1.msra.mxu0 %v2898_v36  ;;  %2213 = vmatprep.subr.mxu1 %v4174_v3  ;;  %v74_v37 = vrot.slane %v69_v25, %v73_v21  ;;  %v78_v43 = vrot.slane %v69_v25, %v77_v31 }
  0x1e   :  { %1967 = vmatmul.mubr.msk.f32.gmra.mxu0 %vm86_vm0, %v2908_v38  ;;  %427 = vmatprep.subr.mxu0 %v2913_v39 }
  0x1f   :  { %428 = vmatpush1.msra.mxu0 %v2919_v40  ;;  %199 = vmatprep.mubr.f32.mxu0 %v4174_v3 }
  0x20   :  { %429 = vmatprep.subr.mxu0 %v2925_v41  ;;  %2202 = vmatmul.mubr.msk.f32.vlgmr.msra.gmra.mxu1 %vm86_vm0, %v2838_v26 }
  0x21   :  { %430 = vmatpush1.msra.mxu0 %v2933_v42  ;;  %2214 = vmatpush3.msra.mxu1 %v3038_v60 }
  0x22   :  { %1968 = vmatmul.mubr.msk.f32.gmra.mxu0 %vm86_vm0, %v2943_v44  ;;  %431 = vmatprep.subr.mxu0 %v2948_v45 }
  0x23   :  { %432 = vmatpush1.msra.mxu0 %v2954_v46  ;;  %205 = vmatprep.mubr.f32.mxu0 %v4174_v3 }
  0x24   :  { %433 = vmatprep.subr.mxu0 %v2960_v47  ;;  %2215 = vmatprep.subr.mxu1 %v4174_v3 }
  0x25   :  { %434 = vmatpush1.msra.mxu0 %v2968_v48  ;;  %2216 = vmatpush3.msra.mxu1 %v3075_v2 }
  0x26   :  { %1969 = vmatmul.mubr.msk.f32.gmra.mxu0 %vm86_vm0, %v2978_v50  ;;  %435 = vmatprep.subr.mxu0 %v2983_v51 }
  0x27   :  { %436 = vmatpush1.msra.mxu0 %v2989_v52  ;;  %211 = vmatprep.mubr.f32.mxu0 %v4174_v3 }
  0x28   :  { %437 = vmatprep.subr.mxu0 %v2995_v53  ;;  %2217 = vmatprep.subr.mxu1 %v4174_v3 }
  0x29   :  { %438 = vmatpush1.msra.mxu0 %v3003_v54  ;;  %2218 = vmatpush3.msra.mxu1 %v3084_v4 }
  0x2a   :  { %1970 = vmatmul.mubr.msk.f32.gmra.mxu0 %vm86_vm0, %v43_v55  ;;  %439 = vmatprep.subr.mxu0 %v3013_v56 }
  0x2b   :  { %440 = vmatpush1.msra.mxu0 %v3019_v57  ;;  %217 = vmatprep.mubr.f32.mxu0 %v4174_v3 }
  0x2c   :  { %441 = vmatprep.subr.mxu0 %v3025_v58  ;;  %2204 = vmatprep.mubr.msk.f32.mxu1 %vm86_vm0, %v2873_v32 }
  0x2d   :  { %442 = vmatpush1.msra.mxu0 %v3033_v59  ;;  %2219 = vmatprep.subr.mxu1 %v4174_v3 }
  0x2e   :  { %1971 = vmatmul.mubr.msk.f32.gmra.mxu0 %vm86_vm0, %v44_v61  ;;  %443 = vmatprep.subr.mxu0 %v3048_v62 }
  0x2f   :  { %444 = vmatpush1.msra.mxu0 %v3054_v63  ;;  %479 = vmatprep.mubr.f32.mxu0 %v4174_v3 }
  0x30   :  { %445 = vmatprep.subr.mxu0 %v3062_v0  ;;  %2205 = vmatmul.mubr.msk.f32.gmra.mxu1 %vm86_vm0, %v2908_v38 }
  0x31   :  { %446 = vmatpush1.msra.mxu0 %v3070_v1  ;;  %2220 = vmatpush3.msra.mxu1 %v3093_v5 }
  0x32   :  { %480 = vmatmul.mubr.f32.vlgmr.msra.gmra.mxu0 %v4174_v3  ;;  %2207 = vmatprep.mubr.msk.f32.mxu1 %vm86_vm0, %v2943_v44 }
  0x33   :  { %2221 = vmatprep.subr.mxu1 %v4174_v3  ;;  %584 = vmatprep.subr.mxu0 %v2808_v20 }
  0x34   :  { %2222 = vmatpush3.msra.mxu1 %v3102_v6  ;;  %585 = vmatpush1.msra.mxu0 %v2816_v22 }
  0x35   :  { %2223 = vmatprep.subr.mxu1 %v4174_v3  ;;  %2208 = vmatmul.mubr.msk.f32.gmra.mxu1 %vm86_vm0, %v2978_v50 }
  0x36   :  { %2224 = vmatpush3.msra.mxu1 %v3113_v7  ;;  %2210 = vmatprep.mubr.msk.f32.mxu1 %vm86_vm0, %v43_v55 }
  0x37   :  { %2225 = vmatprep.subr.mxu1 %v4174_v3  ;;  %586 = vmatprep.subr.mxu0 %v2821_v23 }
  0x38   :  { %2226 = vmatpush3.msra.mxu1 %v3122_v8  ;;  %587 = vmatpush1.msra.mxu0 %v2828_v24 }
  0x39   :  { %2227 = vmatprep.subr.mxu1 %v4174_v3  ;;  %2211 = vmatmul.mubr.msk.f32.gmra.mxu1 %vm86_vm0, %v44_v61 }
  0x3a   :  { %2228 = vmatpush3.msra.mxu1 %v3132_v9  ;;  %2245 = vmatprep.mubr.msk.f32.mxu1 %vm2695_vm1, %v4174_v3 }
  0x3b   :  { %2229 = vmatprep.subr.mxu1 %v4174_v3  ;;  %588 = vmatprep.subr.mxu0 %v2843_v27 }
  0x3c   :  { %2230 = vmatpush3.msra.mxu1 %v3141_v10  ;;  %589 = vmatpush1.msra.mxu0 %v2849_v28 }
  0x3d   :  { %2231 = vmatprep.subr.mxu1 %v4174_v3  ;;  %590 = vmatprep.subr.mxu0 %v2855_v29 }
  0x3e   :  { %2232 = vmatpush3.msra.mxu1 %v3151_v11  ;;  %591 = vmatpush1.msra.mxu0 %v2863_v30 }
  0x3f   :  { %2233 = vmatprep.subr.mxu1 %v4174_v3  ;;  %592 = vmatprep.subr.mxu0 %v2878_v33 }
  0x40   :  { %2234 = vmatpush3.msra.mxu1 %v3160_v12  ;;  %593 = vmatpush1.msra.mxu0 %v2884_v34 }
  0x41   :  { %2235 = vmatprep.subr.mxu1 %v4174_v3  ;;  %594 = vmatprep.subr.mxu0 %v2890_v35 }
  0x42   :  { %2236 = vmatpush3.msra.mxu1 %v3169_v13  ;;  %595 = vmatpush1.msra.mxu0 %v2898_v36 }
  0x43   :  { %2237 = vmatprep.subr.mxu1 %v4174_v3  ;;  %596 = vmatprep.subr.mxu0 %v2913_v39 }
  0x44   :  { %2238 = vmatpush3.msra.mxu1 %v3178_v14  ;;  %597 = vmatpush1.msra.mxu0 %v2919_v40 }
  0x45   :  { %2239 = vmatprep.subr.mxu1 %v4174_v3  ;;  %598 = vmatprep.subr.mxu0 %v2925_v41 }
  0x46   :  { %2240 = vmatpush3.msra.mxu1 %v3187_v15  ;;  %599 = vmatpush1.msra.mxu0 %v2933_v42 }
  0x47   :  { %2241 = vmatprep.subr.mxu1 %v4174_v3  ;;  %600 = vmatprep.subr.mxu0 %v2948_v45 }
  0x48   :  { %2242 = vmatpush3.msra.mxu1 %v3196_v16  ;;  %601 = vmatpush1.msra.mxu0 %v2954_v46 }
  0x49   :  { %2243 = vmatprep.subr.mxu1 %v4174_v3  ;;  %602 = vmatprep.subr.mxu0 %v2960_v47 }
  0x4a   :  { %2244 = vmatpush3.msra.mxu1 %v3205_v17  ;;  %603 = vmatpush1.msra.mxu0 %v2968_v48 }
  0x4b   :  { %2246 = vmatmul.mubr.f32.vlgmr.msra.gmra.mxu1 %v4174_v3  ;;  %2248 = vmatprep.subr.mxu1 %v4174_v3 }
  0x4c   :  { %2249 = vmatpush3.msra.mxu1 %v3038_v60  ;;  %604 = vmatprep.subr.mxu0 %v2983_v51 }
  0x4d   :  { %2250 = vmatprep.subr.mxu1 %v4174_v3  ;;  %605 = vmatpush1.msra.mxu0 %v2989_v52 }
  0x4e   :  { %2251 = vmatpush3.msra.mxu1 %v3075_v2  ;;  %606 = vmatprep.subr.mxu0 %v2995_v53 }
  0x4f   :  { %2252 = vmatprep.subr.mxu1 %v4174_v3  ;;  %607 = vmatpush1.msra.mxu0 %v3003_v54 }
  0x50   :  { %2253 = vmatpush3.msra.mxu1 %v3084_v4  ;;  %608 = vmatprep.subr.mxu0 %v3013_v56 }
  0x51   :  { %2254 = vmatprep.subr.mxu1 %v4174_v3  ;;  %609 = vmatpush1.msra.mxu0 %v3019_v57 }
  0x52   :  { %2255 = vmatpush3.msra.mxu1 %v3093_v5  ;;  %610 = vmatprep.subr.mxu0 %v3025_v58 }
  0x53   :  { %2256 = vmatprep.subr.mxu1 %v4174_v3  ;;  %611 = vmatpush1.msra.mxu0 %v3033_v59 }
  0x54   :  { %2257 = vmatpush3.msra.mxu1 %v3102_v6  ;;  %612 = vmatprep.subr.mxu0 %v3048_v62 }
  0x55   :  { %2258 = vmatprep.subr.mxu1 %v4174_v3  ;;  %613 = vmatpush1.msra.mxu0 %v3054_v63 }
  0x56   :  { %2259 = vmatpush3.msra.mxu1 %v3113_v7  ;;  %614 = vmatprep.subr.mxu0 %v3062_v0 }
  0x57   :  { %2260 = vmatprep.subr.mxu1 %v4174_v3  ;;  %615 = vmatpush1.msra.mxu0 %v3070_v1 }
  0x58   :  { %2261 = vmatpush3.msra.mxu1 %v3122_v8  ;;  %648 = vmatprep.mubr.f32.mxu0 %v4174_v3 }
  0x59   :  { %2262 = vmatprep.subr.mxu1 %v4174_v3  ;;  %2280 = vmatprep.mubr.msk.f32.mxu1 %vm2695_vm1, %v4174_v3 }
  0x5a   :  { %2263 = vmatpush3.msra.mxu1 %v3132_v9  ;;  %753 = vmatprep.subr.mxu0 %v2808_v20 }
  0x5b   :  { %2264 = vmatprep.subr.mxu1 %v4174_v3 }
  0x5c   :  { %2265 = vmatpush3.msra.mxu1 %v3141_v10 }
  0x5d   :  { %2266 = vmatprep.subr.mxu1 %v4174_v3 }
  0x5e   :  { %2267 = vmatpush3.msra.mxu1 %v3151_v11 }
  0x5f   :  { %2268 = vmatprep.subr.mxu1 %v4174_v3 }
  0x60   :  { %2269 = vmatpush3.msra.mxu1 %v3160_v12 }
  0x61   :  { %2270 = vmatprep.subr.mxu1 %v4174_v3 }
  0x62   :  { %2271 = vmatpush3.msra.mxu1 %v3169_v13 }
  0x63   :  { %2272 = vmatprep.subr.mxu1 %v4174_v3 }
  0x64   :  { %2273 = vmatpush3.msra.mxu1 %v3178_v14 }
  0x65   :  { %2274 = vmatprep.subr.mxu1 %v4174_v3 }
  0x66   :  { %2275 = vmatpush3.msra.mxu1 %v3187_v15 }
  0x67   :  { %2276 = vmatprep.subr.mxu1 %v4174_v3 }
  0x68   :  { %2277 = vmatpush3.msra.mxu1 %v3196_v16 }
  0x69   :  { %2278 = vmatprep.subr.mxu1 %v4174_v3 }
  0x6a   :  { %2279 = vmatpush3.msra.mxu1 %v3205_v17 }
  0x6b   :  { %2283 = vmatprep.subr.mxu1 %v4174_v3 }
  0xd2   :  { %v177_v26 = vpop.f32.mrf.mxu0 }
  0xd4   :  { %v179_v32 = vpop.f32.mrf.mxu0 }
  0xd6   :  { %v183_v38 = vpop.f32.mrf.mxu0 }
  0xd7   :  { %v3267_v44 = vadd.f32 %v183_v38, %v74_v37 }
  0xd8   :  { %v185_v49 = vpop.f32.mrf.mxu0 }
  0xd9   :  { %4198 = vst [vmem:[#allocation10_spill] sm:$0xff] %v3267_v44  ;;  %v3269_v50 = vadd.f32 %v185_v49, %v78_v43  ;;  %v81_v49 = vsub.s32 2, %v72_v19 }
  0xda   :  { %v189_v55 = vpop.f32.mrf.mxu0 }
  0xdb   :  { %4199 = vst [vmem:[#allocation11_spill] sm:$0xff] %v3269_v50  ;;  %v3271_v61 = vadd.f32 %v189_v55, %v74_v37 }
  0xdc   :  { %v191_v18 = vpop.f32.mrf.mxu0 }
  0xdd   :  { %4200 = vst [vmem:[#allocation12_spill] sm:$0xff] %v3271_v61  ;;  %v3273_v3 = vadd.f32 %v191_v18, %v78_v43  ;;  %v82_v18 = vrot.slane %v69_v25, %v81_v49 }
  0xde   :  { %v195_v20 = vpop.f32.mrf.mxu0 }
  0xdf   :  { %4201 = vst [vmem:[#allocation13_spill] sm:$0xff] %v3273_v3  ;;  %v3275_v17 = vadd.f32 %v195_v20, %v74_v37 }
  0xe0   :  { %v197_v1 = vpop.f32.mrf.mxu0 }
  0xe1   :  { %4202 = vst [vmem:[#allocation14_spill] sm:$0xff] %v3275_v17  ;;  %v3277_v0 = vadd.f32 %v197_v1, %v78_v43  ;;  %v2203_v1 = vpop.f32.mrf.mxu1 }
  0xe2   :  { %v201_v21 = vpop.f32.mrf.mxu0 }
  0xe3   :  { %4203 = vst [vmem:[#allocation15_spill] sm:$0xff] %v3277_v0  ;;  %v3279_v16 = vadd.f32 %v201_v21, %v74_v37  ;;  %v3291_v21 = vadd.f32 %v2203_v1, %v82_v18 }
  0xe4   :  { %v203_v31 = vpop.f32.mrf.mxu0 }
  0xe5   :  { %4204 = vst [vmem:[#allocation16_spill] sm:$0xff] %v3279_v16  ;;  %v3281_v38 = vadd.f32 %v203_v31, %v78_v43 }
  0xe6   :  { %v207_v50 = vpop.f32.mrf.mxu0 }
  0xe7   :  { %4205 = vst [vmem:[#allocation17_spill] sm:$0xff] %v3281_v38  ;;  %v3283_v44 = vadd.f32 %v207_v50, %v74_v37  ;;  %v178_v38 = vadd.f32 %v177_v26, %v74_v37 }
  0xe8   :  { %v209_v55 = vpop.f32.mrf.mxu0 }
  0xe9   :  { %4206 = vst [vmem:[#allocation18_spill] sm:$0xff] %v3283_v44  ;;  %v3285_v61 = vadd.f32 %v209_v55, %v78_v43  ;;  %v290_v55 = vpop.f32.mrf.mxu1 }
  0xea   :  { %v213_v3 = vpop.f32.mrf.mxu0 }
  0xeb   :  { %4207 = vst [vmem:[#allocation19_spill] sm:$0xff] %v3285_v61  ;;  %v3287_v20 = vadd.f32 %v213_v3, %v74_v37 }
  0xec   :  { %v215_v17 = vpop.f32.mrf.mxu0 }
  0xed   :  { %4208 = vst [vmem:[#allocation20_spill] sm:$0xff] %v3287_v20  ;;  %v3289_v0 = vadd.f32 %v215_v17, %v78_v43  ;;  %v180_v17 = vadd.f32 %v179_v32, %v78_v43 }
  0xee   :  { %v219_v16 = vpop.f32.mrf.mxu0 }
  0xef   :  { %4209 = vst [vmem:[#allocation21_spill] sm:$0xff] %v3289_v0  ;;  %v3293_v31 = vadd.f32 %v219_v16, %v74_v37 }
  0xf0   :  { %v221_v19 = vpop.f32.mrf.mxu0  ;;  %v2206_v25 = vpop.f32.mrf.mxu1 }
  0xf1   :  { %4210 = vst [vmem:[#allocation22_spill] sm:$0xff] %v3293_v31  ;;  %v3295_v50 = vadd.f32 %v221_v19, %v78_v43  ;;  %v3297_v3 = vadd.f32 %v2206_v25, %v82_v18 }
  0xf2   :  { %v481_v44 = vpop.f32.mrf.mxu0  ;;  %v300_v63 = vpop.f32.mrf.mxu1 }
  0xf3   :  { %4211 = vst [vmem:[#allocation23_spill] sm:$0xff] %v3295_v50  ;;  %v556_v61 = vadd.f32 %v481_v44, %v178_v38  ;;  %4212 = vst [vmem:[#allocation24_spill] sm:$0xff] %v3297_v3  ;;  %v3299_v1 = vadd.f32 %v300_v63, %v82_v18 }
  0xf4   :  { %v483_v20 = vpop.f32.mrf.mxu0 }
  0xf5   :  { %v1981_v49 = vmul.f32 -1.442695, %v556_v61  ;;  %4213 = vst [vmem:[#allocation25_spill] sm:$0xff] %v3299_v1  ;;  %v2209_v0 = vpop.f32.mrf.mxu1  ;;  %v563_v16 = vadd.f32 %v483_v20, %v180_v17 }
  0xf6   :  { %v3301_v31 = vadd.f32 %v2209_v0, %v82_v18  ;;  %v3312_v0 = vld [vmem:[%s4168_s4] ss:$0 sm:$0xff] }
  0xf7   :  { %2565 = vpow2.f32 %v1981_v49  ;;  %v310_v26 = vpop.f32.mrf.mxu1  ;;  %v1982_v50 = vmul.f32 -1.442695, %v563_v16 }
  0xf8   :  { %4214 = vst [vmem:[#allocation26_spill] sm:$0xff] %v3301_v31  ;;  %v3303_v37 = vadd.f32 %v310_v26, %v82_v18  ;;  %v291_v26 = vadd.f32 %v290_v55, %v82_v18  ;;  %v4219_v55 = vld [vmem:[#allocation5_spill] sm:$0xff] }
  0xf9   :  { %v2212_v19 = vpop.f32.mrf.mxu1  ;;  %2567 = vpow2.f32 %v1982_v50 }
  0xfa   :  { %4215 = vst [vmem:[#allocation27_spill] sm:$0xff] %v3303_v37  ;;  %v3305_v44 = vadd.f32 %v2212_v19, %v82_v18 }
  0xfb   :  { %v320_v61 = vpop.f32.mrf.mxu1 }
  0xfc   :  { %4216 = vst [vmem:[#allocation28_spill] sm:$0xff] %v3305_v44  ;;  %v3307_v38 = vadd.f32 %v320_v61, %v82_v18  ;;  %v4218_v18 = vmov 0.0  }
  0xfe   :  { %4217 = vst [vmem:[#allocation29_spill] sm:$0xff] %v3307_v38 }
 0x104   :  { %v2566_v25 = vpop.eup %2565 }
 0x105   :  { %v560_v32 = vadd.f32 1.0, %v2566_v25 }
 0x106   :  { %v2568_v63 = vpop.eup %2567 }
 0x107   :  { %2569 = vrcp.f32 %v560_v32  ;;  %v567_v49 = vadd.f32 1.0, %v2568_v63  ;;  %v4222_v63 = vld [vmem:[#allocation7_spill] sm:$0xff] }
 0x109   :  { %2571 = vrcp.f32 %v567_v49 }
 0x10b   :  { %v552_v43 = vpop.f32.mrf.mxu1 }
 0x10c   :  { %v570_v17 = vadd.f32 %v3312_v0, %v552_v43  ;;  %v4223_v43 = vld [vmem:[#allocation9_spill] sm:$0xff] }
 0x10d   :  { %v2247_v20 = vpop.f32.mrf.mxu1 }
 0x10e   :  { %v4224_v20 = vld [vmem:[#allocation4_spill] sm:$0xff] }
 0x114   :  { %v2570_v16 = vpop.eup %2569 }
 0x115   :  { %v571_v19 = vmul.f32 %v2570_v16, %v570_v17  ;;  %v4225_v16 = vld [vmem:[#allocation10_spill] sm:$0xff] }
 0x116   :  { %v2572_v50 = vpop.eup %2571 }
 0x117   :  { %v572_v61 = vadd.f32 %v571_v19, %v291_v26  ;;  %v574_v25 = vsub.f32 1.0, %v2572_v50  ;;  %v576_v38 = vmul.f32 0.0, %v2572_v50 }
 0x119   :  { %2573 = vtanh.f32 %v572_v61 }
 0x126   :  { %v2574_v32 = vpop.eup %2573 }
 0x127   :  { %v575_v44 = vmul.f32 %v2574_v32, %v574_v25  ;;  %v4226_v25 = vld [vmem:[#allocation11_spill] sm:$0xff] }
 0x129   :  { %v3315_v31 = vadd.f32 %v576_v38, %v575_v44  ;;  %v4220_v44 = vld [vmem:[#allocation8_spill] sm:$0xff]  ;;  %v4221_v38 = vld [vmem:[#allocation6_spill] sm:$0xff] }
 0x12b   :  { %649 = vmatmul.mubr.f32.vlgmr.msra.gmra.mxu0 %v3315_v31  ;;  %2281 = vmatmul.mubr.f32.vlgmr.msra.gmra.mxu1 %v3315_v31 }
 0x12c   :  { %754 = vmatpush1.msra.mxu0 %v2816_v22  ;;  %2284 = vmatpush3.msra.mxu1 %v3038_v60 }
 0x12d   :  { %755 = vmatprep.subr.mxu0 %v2821_v23  ;;  %2285 = vmatprep.subr.mxu1 %v4218_v18 }
 0x12e   :  { %756 = vmatpush1.msra.mxu0 %v2828_v24  ;;  %2286 = vmatpush3.msra.mxu1 %v3075_v2 }
 0x12f   :  { %757 = vmatprep.subr.mxu0 %v2843_v27  ;;  %2287 = vmatprep.subr.mxu1 %v4218_v18 }
 0x130   :  { %758 = vmatpush1.msra.mxu0 %v2849_v28  ;;  %2288 = vmatpush3.msra.mxu1 %v3084_v4 }
 0x131   :  { %759 = vmatprep.subr.mxu0 %v2855_v29  ;;  %2289 = vmatprep.subr.mxu1 %v4218_v18 }
 0x132   :  { %760 = vmatpush1.msra.mxu0 %v2863_v30  ;;  %2290 = vmatpush3.msra.mxu1 %v3093_v5 }
 0x133   :  { %761 = vmatprep.subr.mxu0 %v2878_v33  ;;  %2291 = vmatprep.subr.mxu1 %v4218_v18 }
 0x134   :  { %762 = vmatpush1.msra.mxu0 %v2884_v34  ;;  %2292 = vmatpush3.msra.mxu1 %v3102_v6 }
 0x135   :  { %763 = vmatprep.subr.mxu0 %v2890_v35  ;;  %2293 = vmatprep.subr.mxu1 %v4218_v18 }
 0x136   :  { %764 = vmatpush1.msra.mxu0 %v2898_v36  ;;  %2294 = vmatpush3.msra.mxu1 %v3113_v7 }
 0x137   :  { %765 = vmatprep.subr.mxu0 %v2913_v39  ;;  %2295 = vmatprep.subr.mxu1 %v4218_v18 }
 0x138   :  { %766 = vmatpush1.msra.mxu0 %v2919_v40  ;;  %2296 = vmatpush3.msra.mxu1 %v3122_v8 }
 0x139   :  { %767 = vmatprep.subr.mxu0 %v2925_v41  ;;  %2297 = vmatprep.subr.mxu1 %v4218_v18 }
 0x13a   :  { %768 = vmatpush1.msra.mxu0 %v2933_v42  ;;  %2298 = vmatpush3.msra.mxu1 %v3132_v9 }
 0x13b   :  { %769 = vmatprep.subr.mxu0 %v2948_v45  ;;  %2299 = vmatprep.subr.mxu1 %v4218_v18 }
 0x13c   :  { %770 = vmatpush1.msra.mxu0 %v2954_v46  ;;  %2300 = vmatpush3.msra.mxu1 %v3141_v10 }
 0x13d   :  { %771 = vmatprep.subr.mxu0 %v2960_v47  ;;  %2301 = vmatprep.subr.mxu1 %v4218_v18 }
 0x13e   :  { %772 = vmatpush1.msra.mxu0 %v2968_v48  ;;  %2302 = vmatpush3.msra.mxu1 %v3151_v11 }
 0x13f   :  { %773 = vmatprep.subr.mxu0 %v2983_v51  ;;  %2303 = vmatprep.subr.mxu1 %v4218_v18 }
 0x140   :  { %774 = vmatpush1.msra.mxu0 %v2989_v52  ;;  %2304 = vmatpush3.msra.mxu1 %v3160_v12 }
 0x141   :  { %775 = vmatprep.subr.mxu0 %v2995_v53  ;;  %2305 = vmatprep.subr.mxu1 %v4218_v18 }
 0x142   :  { %776 = vmatpush1.msra.mxu0 %v3003_v54  ;;  %2306 = vmatpush3.msra.mxu1 %v3169_v13 }
 0x143   :  { %777 = vmatprep.subr.mxu0 %v3013_v56  ;;  %2307 = vmatprep.subr.mxu1 %v4218_v18 }
 0x144   :  { %778 = vmatpush1.msra.mxu0 %v3019_v57  ;;  %2308 = vmatpush3.msra.mxu1 %v3178_v14 }
 0x145   :  { %779 = vmatprep.subr.mxu0 %v3025_v58  ;;  %2309 = vmatprep.subr.mxu1 %v4218_v18 }
 0x146   :  { %780 = vmatpush1.msra.mxu0 %v3033_v59  ;;  %2310 = vmatpush3.msra.mxu1 %v3187_v15 }
 0x147   :  { %781 = vmatprep.subr.mxu0 %v3048_v62  ;;  %2311 = vmatprep.subr.mxu1 %v4218_v18 }
 0x148   :  { %782 = vmatpush1.msra.mxu0 %v4219_v55  ;;  %2312 = vmatpush3.msra.mxu1 %v4220_v44 }
 0x149   :  { %783 = vmatprep.subr.mxu0 %v4221_v38  ;;  %2313 = vmatprep.subr.mxu1 %v4218_v18 }
 0x14a   :  { %784 = vmatpush1.msra.mxu0 %v4222_v63  ;;  %817 = vmatprep.mubr.f32.mxu0 %v4218_v18 }
 0x14b   :  { %2314 = vmatpush3.msra.mxu1 %v4223_v43  ;;  %2315 = vmatprep.mubr.msk.f32.mxu1 %vm2695_vm1, %v4218_v18 }
 0x14c   :  { %922 = vmatprep.subr.mxu0 %v4224_v20  ;;  %2318 = vmatprep.subr.mxu1 %v4218_v18 }
 0x1eb   :  { %v650_v49 = vpop.f32.mrf.mxu0  ;;  %v721_v17 = vpop.f32.mrf.mxu1 }
 0x1ec   :  { %v725_v26 = vadd.f32 %v650_v49, %v4225_v16  ;;  %v739_v20 = vadd.f32 %v3312_v0, %v721_v17 }
 0x1ed   :  { %v2282_v19 = vpop.f32.mrf.mxu1  ;;  %v652_v50 = vpop.f32.mrf.mxu0 }
 0x1ee   :  { %v1983_v61 = vmul.f32 -1.442695, %v725_v26  ;;  %v732_v32 = vadd.f32 %v652_v50, %v4226_v25 }
 0x1f0   :  { %2575 = vpow2.f32 %v1983_v61  ;;  %v1984_v37 = vmul.f32 -1.442695, %v732_v32 }
 0x1f2   :  { %2577 = vpow2.f32 %v1984_v37 }
 0x1fd   :  { %v2576_v3 = vpop.eup %2575 }
 0x1fe   :  { %v729_v1 = vadd.f32 1.0, %v2576_v3  ;;  %v4229_v3 = vld [vmem:[#allocation7_spill] sm:$0xff] }
 0x1ff   :  { %v2578_v43 = vpop.eup %2577 }
 0x200   :  { %2579 = vrcp.f32 %v729_v1  ;;  %v736_v63 = vadd.f32 1.0, %v2578_v43  ;;  %v4230_v1 = vld [vmem:[#allocation9_spill] sm:$0xff]  ;;  %v4232_v43 = vld [vmem:[#allocation12_spill] sm:$0xff] }
 0x202   :  { %2581 = vrcp.f32 %v736_v63 }
 0x20d   :  { %v2580_v38 = vpop.eup %2579 }
 0x20e   :  { %v740_v44 = vmul.f32 %v2580_v38, %v739_v20 }
 0x20f   :  { %v2582_v16 = vpop.eup %2581 }
 0x210   :  { %v741_v49 = vadd.f32 %v740_v44, %v3291_v21  ;;  %v743_v26 = vsub.f32 1.0, %v2582_v16  ;;  %v745_v50 = vmul.f32 %v2582_v16, %v3315_v31  ;;  %v4227_v21 = vld [vmem:[#allocation8_spill] sm:$0xff]  ;;  %v4228_v31 = vld [vmem:[#allocation6_spill] sm:$0xff] }
 0x211   :  { %v4231_v44 = vld [vmem:[#allocation4_spill] sm:$0xff] }
 0x212   :  { %2583 = vtanh.f32 %v741_v49  ;;  %v4233_v49 = vld [vmem:[#allocation13_spill] sm:$0xff] }
 0x21f   :  { %v2584_v19 = vpop.eup %2583 }
 0x220   :  { %v744_v61 = vmul.f32 %v2584_v19, %v743_v26 }
 0x222   :  { %v3391_v37 = vadd.f32 %v745_v50, %v744_v61 }
 0x224   :  { %818 = vmatmul.mubr.f32.vlgmr.msra.gmra.mxu0 %v3391_v37  ;;  %2316 = vmatmul.mubr.f32.vlgmr.msra.gmra.mxu1 %v3391_v37 }
 0x225   :  { %923 = vmatpush1.msra.mxu0 %v2816_v22  ;;  %2319 = vmatpush3.msra.mxu1 %v3038_v60 }
 0x226   :  { %924 = vmatprep.subr.mxu0 %v2821_v23  ;;  %2320 = vmatprep.subr.mxu1 %v4218_v18 }
 0x227   :  { %925 = vmatpush1.msra.mxu0 %v2828_v24  ;;  %2321 = vmatpush3.msra.mxu1 %v3075_v2 }
 0x228   :  { %926 = vmatprep.subr.mxu0 %v2843_v27  ;;  %2322 = vmatprep.subr.mxu1 %v4218_v18 }
 0x229   :  { %927 = vmatpush1.msra.mxu0 %v2849_v28  ;;  %2323 = vmatpush3.msra.mxu1 %v3084_v4 }
 0x22a   :  { %928 = vmatprep.subr.mxu0 %v2855_v29  ;;  %2324 = vmatprep.subr.mxu1 %v4218_v18 }
 0x22b   :  { %929 = vmatpush1.msra.mxu0 %v2863_v30  ;;  %2325 = vmatpush3.msra.mxu1 %v3093_v5 }
 0x22c   :  { %930 = vmatprep.subr.mxu0 %v2878_v33  ;;  %2326 = vmatprep.subr.mxu1 %v4218_v18 }
 0x22d   :  { %931 = vmatpush1.msra.mxu0 %v2884_v34  ;;  %2327 = vmatpush3.msra.mxu1 %v3102_v6 }
 0x22e   :  { %932 = vmatprep.subr.mxu0 %v2890_v35  ;;  %2328 = vmatprep.subr.mxu1 %v4218_v18 }
 0x22f   :  { %933 = vmatpush1.msra.mxu0 %v2898_v36  ;;  %2329 = vmatpush3.msra.mxu1 %v3113_v7 }
 0x230   :  { %934 = vmatprep.subr.mxu0 %v2913_v39  ;;  %2330 = vmatprep.subr.mxu1 %v4218_v18 }
 0x231   :  { %935 = vmatpush1.msra.mxu0 %v2919_v40  ;;  %2331 = vmatpush3.msra.mxu1 %v3122_v8 }
 0x232   :  { %936 = vmatprep.subr.mxu0 %v2925_v41  ;;  %2332 = vmatprep.subr.mxu1 %v4218_v18 }
 0x233   :  { %937 = vmatpush1.msra.mxu0 %v2933_v42  ;;  %2333 = vmatpush3.msra.mxu1 %v3132_v9 }
 0x234   :  { %938 = vmatprep.subr.mxu0 %v2948_v45  ;;  %2334 = vmatprep.subr.mxu1 %v4218_v18 }
 0x235   :  { %939 = vmatpush1.msra.mxu0 %v2954_v46  ;;  %2335 = vmatpush3.msra.mxu1 %v3141_v10 }
 0x236   :  { %940 = vmatprep.subr.mxu0 %v2960_v47  ;;  %2336 = vmatprep.subr.mxu1 %v4218_v18 }
 0x237   :  { %941 = vmatpush1.msra.mxu0 %v2968_v48  ;;  %2337 = vmatpush3.msra.mxu1 %v3151_v11 }
 0x238   :  { %942 = vmatprep.subr.mxu0 %v2983_v51  ;;  %2338 = vmatprep.subr.mxu1 %v4218_v18 }
 0x239   :  { %943 = vmatpush1.msra.mxu0 %v2989_v52  ;;  %2339 = vmatpush3.msra.mxu1 %v3160_v12 }
 0x23a   :  { %944 = vmatprep.subr.mxu0 %v2995_v53  ;;  %2340 = vmatprep.subr.mxu1 %v4218_v18 }
 0x23b   :  { %945 = vmatpush1.msra.mxu0 %v3003_v54  ;;  %2341 = vmatpush3.msra.mxu1 %v3169_v13 }
 0x23c   :  { %946 = vmatprep.subr.mxu0 %v3013_v56  ;;  %2342 = vmatprep.subr.mxu1 %v4218_v18 }
 0x23d   :  { %947 = vmatpush1.msra.mxu0 %v3019_v57  ;;  %2343 = vmatpush3.msra.mxu1 %v3178_v14 }
 0x23e   :  { %948 = vmatprep.subr.mxu0 %v3025_v58  ;;  %2344 = vmatprep.subr.mxu1 %v4218_v18 }
 0x23f   :  { %949 = vmatpush1.msra.mxu0 %v3033_v59  ;;  %2345 = vmatpush3.msra.mxu1 %v3187_v15 }
 0x240   :  { %950 = vmatprep.subr.mxu0 %v3048_v62  ;;  %2346 = vmatprep.subr.mxu1 %v4218_v18 }
 0x241   :  { %951 = vmatpush1.msra.mxu0 %v4219_v55  ;;  %2347 = vmatpush3.msra.mxu1 %v4227_v21  ;;  %v4234_v21 = vld [vmem:[#allocation25_spill] sm:$0xff] }
 0x242   :  { %952 = vmatprep.subr.mxu0 %v4228_v31  ;;  %2348 = vmatprep.subr.mxu1 %v4218_v18 }
 0x243   :  { %953 = vmatpush1.msra.mxu0 %v4229_v3  ;;  %986 = vmatprep.mubr.f32.mxu0 %v4218_v18 }
 0x244   :  { %2349 = vmatpush3.msra.mxu1 %v4230_v1  ;;  %2350 = vmatprep.mubr.msk.f32.mxu1 %vm2695_vm1, %v4218_v18 }
 0x245   :  { %1091 = vmatprep.subr.mxu0 %v4231_v44  ;;  %2353 = vmatprep.subr.mxu1 %v4218_v18 }
 0x2e4   :  { %v819_v38 = vpop.f32.mrf.mxu0  ;;  %v890_v63 = vpop.f32.mrf.mxu1 }
 0x2e5   :  { %v894_v20 = vadd.f32 %v819_v38, %v4232_v43  ;;  %v908_v44 = vadd.f32 %v3312_v0, %v890_v63  ;;  %v3588_v63 = vld [vmem:[%s4166_s2 + $0x138] sm:$0xff] }
 0x2e6   :  { %v2317_v17 = vpop.f32.mrf.mxu1  ;;  %v821_v32 = vpop.f32.mrf.mxu0 }
 0x2e7   :  { %v1985_v25 = vmul.f32 -1.442695, %v894_v20  ;;  %v901_v16 = vadd.f32 %v821_v32, %v4233_v49 }
 0x2e9   :  { %2585 = vpow2.f32 %v1985_v25  ;;  %v1986_v26 = vmul.f32 -1.442695, %v901_v16  ;;  %v3602_v16 = vld [vmem:[%s4166_s2 + $0x120] sm:$0xff] }
 0x2eb   :  { %2587 = vpow2.f32 %v1986_v26  ;;  %v3616_v26 = vld [vmem:[%s4166_s2 + $0x108] sm:$0xff] }
 0x2f6   :  { %v2586_v19 = vpop.eup %2585 }
 0x2f7   :  { %v898_v61 = vadd.f32 1.0, %v2586_v19  ;;  %v3630_v19 = vld [vmem:[%s4166_s2 + $0xf0] sm:$0xff] }
 0x2f8   :  { %v2588_v50 = vpop.eup %2587 }
 0x2f9   :  { %2589 = vrcp.f32 %v898_v61  ;;  %v905_v1 = vadd.f32 1.0, %v2588_v50  ;;  %v3644_v61 = vld [vmem:[%s4166_s2 + $0xd8] sm:$0xff]  ;;  %v3658_v50 = vld [vmem:[%s4166_s2 + $0xc0] sm:$0xff] }
 0x2fb   :  { %2591 = vrcp.f32 %v905_v1  ;;  %v3581_v1 = vld [vmem:[%s4166_s2 + $0x140] sm:$0xff] }
 0x306   :  { %v2590_v3 = vpop.eup %2589 }
 0x307   :  { %v909_v31 = vmul.f32 %v2590_v3, %v908_v44  ;;  %v3574_v3 = vld [vmem:[%s4166_s2 + $0x150] sm:$0xff]  ;;  %v3672_v44 = vld [vmem:[%s4166_s2 + $0xa8] sm:$0xff] }
 0x308   :  { %v2592_v43 = vpop.eup %2591 }
 0x309   :  { %v910_v38 = vadd.f32 %v909_v31, %v4234_v21  ;;  %v912_v20 = vsub.f32 1.0, %v2592_v43  ;;  %v914_v32 = vmul.f32 %v2592_v43, %v3391_v37  ;;  %v3555_v37 = vld [vmem:[%s4166_s2 + $0x168] sm:$0xff]  ;;  %v3561_v21 = vld [vmem:[%s4166_s2 + $0x178] sm:$0xff] }
 0x30a   :  { %v3567_v31 = vld [vmem:[%s4166_s2 + $0x158] sm:$0xff] }
 0x30b   :  { %2593 = vtanh.f32 %v910_v38  ;;  %v3686_v38 = vld [vmem:[%s4166_s2 + $0x90] sm:$0xff]  ;;  %v3700_v43 = vld [vmem:[%s4166_s2 + $0x78] sm:$0xff] }
 0x318   :  { %v2594_v17 = vpop.eup %2593 }
 0x319   :  { %v913_v25 = vmul.f32 %v2594_v17, %v912_v20  ;;  %v3714_v20 = vld [vmem:[%s4166_s2 + $0x60] sm:$0xff]  ;;  %v3728_v17 = vld [vmem:[%s4166_s2 + $0x48] sm:$0xff] }
 0x31b   :  { %v3467_v49 = vadd.f32 %v914_v32, %v913_v25  ;;  %v3742_v25 = vld [vmem:[%s4166_s2 + $0x30] sm:$0xff]  ;;  %v3756_v32 = vld [vmem:[%s4166_s2 + $0x18] sm:$0xff] }
 0x31d   :  { %987 = vmatmul.mubr.f32.vlgmr.msra.gmra.mxu0 %v3467_v49  ;;  %2351 = vmatmul.mubr.f32.vlgmr.msra.gmra.mxu1 %v3467_v49 }
 0x31e   :  { %1092 = vmatpush1.msra.mxu0 %v2816_v22  ;;  %2354 = vmatpush3.msra.mxu1 %v3038_v60  ;;  %v4235_v22 = vld [vmem:[#allocation8_spill] sm:$0xff] }
 0x31f   :  { %1093 = vmatprep.subr.mxu0 %v2821_v23  ;;  %2355 = vmatprep.subr.mxu1 %v4218_v18  ;;  %v4236_v23 = vld [vmem:[#allocation6_spill] sm:$0xff] }
 0x320   :  { %1094 = vmatpush1.msra.mxu0 %v2828_v24  ;;  %2356 = vmatpush3.msra.mxu1 %v3075_v2  ;;  %v4237_v24 = vld [vmem:[#allocation7_spill] sm:$0xff] }
 0x321   :  { %1095 = vmatprep.subr.mxu0 %v2843_v27  ;;  %2357 = vmatprep.subr.mxu1 %v4218_v18  ;;  %v4238_v27 = vld [vmem:[#allocation9_spill] sm:$0xff] }
 0x322   :  { %1096 = vmatpush1.msra.mxu0 %v2849_v28  ;;  %2358 = vmatpush3.msra.mxu1 %v3084_v4  ;;  %v3539_v28 = vld [vmem:[%s4166_s2 + $0x170] sm:$0xff] }
 0x323   :  { %1097 = vmatprep.subr.mxu0 %v2855_v29  ;;  %2359 = vmatprep.subr.mxu1 %v4218_v18 }
 0x324   :  { %1098 = vmatpush1.msra.mxu0 %v2863_v30  ;;  %2360 = vmatpush3.msra.mxu1 %v3093_v5 }
 0x325   :  { %1099 = vmatprep.subr.mxu0 %v2878_v33  ;;  %2361 = vmatprep.subr.mxu1 %v4218_v18  ;;  %v4239_v33 = vld [vmem:[#allocation14_spill] sm:$0xff] }
 0x326   :  { %1100 = vmatpush1.msra.mxu0 %v2884_v34  ;;  %2362 = vmatpush3.msra.mxu1 %v3102_v6 }
 0x327   :  { %1101 = vmatprep.subr.mxu0 %v2890_v35  ;;  %2363 = vmatprep.subr.mxu1 %v4218_v18 }
 0x328   :  { %1102 = vmatpush1.msra.mxu0 %v2898_v36  ;;  %2364 = vmatpush3.msra.mxu1 %v3113_v7 }
 0x329   :  { %1103 = vmatprep.subr.mxu0 %v2913_v39  ;;  %2365 = vmatprep.subr.mxu1 %v4218_v18 }
 0x32a   :  { %1104 = vmatpush1.msra.mxu0 %v2919_v40  ;;  %2366 = vmatpush3.msra.mxu1 %v3122_v8  ;;  %v4240_v40 = vld [vmem:[#allocation15_spill] sm:$0xff] }
 0x32b   :  { %1105 = vmatprep.subr.mxu0 %v2925_v41  ;;  %2367 = vmatprep.subr.mxu1 %v4218_v18 }
 0x32c   :  { %1106 = vmatpush1.msra.mxu0 %v2933_v42  ;;  %2368 = vmatpush3.msra.mxu1 %v3132_v9 }
 0x32d   :  { %1107 = vmatprep.subr.mxu0 %v2948_v45  ;;  %2369 = vmatprep.subr.mxu1 %v4218_v18 }
 0x32e   :  { %1108 = vmatpush1.msra.mxu0 %v2954_v46  ;;  %2370 = vmatpush3.msra.mxu1 %v3141_v10 }
 0x32f   :  { %1109 = vmatprep.subr.mxu0 %v2960_v47  ;;  %2371 = vmatprep.subr.mxu1 %v4218_v18 }
 0x330   :  { %1110 = vmatpush1.msra.mxu0 %v2968_v48  ;;  %2372 = vmatpush3.msra.mxu1 %v3151_v11 }
 0x331   :  { %1111 = vmatprep.subr.mxu0 %v2983_v51  ;;  %2373 = vmatprep.subr.mxu1 %v4218_v18 }
 0x332   :  { %1112 = vmatpush1.msra.mxu0 %v2989_v52  ;;  %2374 = vmatpush3.msra.mxu1 %v3160_v12 }
 0x333   :  { %1113 = vmatprep.subr.mxu0 %v2995_v53  ;;  %2375 = vmatprep.subr.mxu1 %v4218_v18 }
 0x334   :  { %1114 = vmatpush1.msra.mxu0 %v3003_v54  ;;  %2376 = vmatpush3.msra.mxu1 %v3169_v13  ;;  %v4241_v54 = vld [vmem:[#allocation24_spill] sm:$0xff] }
 0x335   :  { %1115 = vmatprep.subr.mxu0 %v3013_v56  ;;  %2377 = vmatprep.subr.mxu1 %v4218_v18 }
 0x336   :  { %1116 = vmatpush1.msra.mxu0 %v3019_v57  ;;  %2378 = vmatpush3.msra.mxu1 %v3178_v14 }
 0x337   :  { %1117 = vmatprep.subr.mxu0 %v3025_v58  ;;  %2379 = vmatprep.subr.mxu1 %v4218_v18 }
 0x338   :  { %1118 = vmatpush1.msra.mxu0 %v3033_v59  ;;  %2380 = vmatpush3.msra.mxu1 %v3187_v15 }
 0x339   :  { %1119 = vmatprep.subr.mxu0 %v3048_v62  ;;  %2381 = vmatprep.subr.mxu1 %v4218_v18 }
 0x33a   :  { %1120 = vmatpush1.msra.mxu0 %v4219_v55  ;;  %2382 = vmatpush3.msra.mxu1 %v4235_v22 }
 0x33b   :  { %1121 = vmatprep.subr.mxu0 %v4236_v23  ;;  %2383 = vmatprep.subr.mxu1 %v4218_v18 }
 0x33c   :  { %1122 = vmatpush1.msra.mxu0 %v4237_v24  ;;  %1155 = vmatprep.mubr.f32.mxu0 %v4218_v18  ;;  %v4244_v24 = vld [vmem:[#allocation16_spill] sm:$0xff] }
 0x33d   :  { %2384 = vmatpush3.msra.mxu1 %v4238_v27  ;;  %2385 = vmatprep.mubr.msk.f32.mxu1 %vm2695_vm1, %v4218_v18 }
 0x33e   :  { %1260 = vmatprep.subr.mxu0 %v3539_v28  ;;  %2388 = vmatprep.subr.mxu1 %v4218_v18 }
 0x3dd   :  { %v988_v29 = vpop.f32.mrf.mxu0  ;;  %v1059_v30 = vpop.f32.mrf.mxu1 }
 0x3de   :  { %v1063_v34 = vadd.f32 %v988_v29, %v4239_v33  ;;  %v1077_v51 = vadd.f32 %v3312_v0, %v1059_v30 }
 0x3df   :  { %v2352_v35 = vpop.f32.mrf.mxu1  ;;  %v990_v39 = vpop.f32.mrf.mxu0 }
 0x3e0   :  { %v1987_v36 = vmul.f32 -1.442695, %v1063_v34  ;;  %v1070_v41 = vadd.f32 %v990_v39, %v4240_v40  ;;  %v4245_v35 = vld [vmem:[#allocation17_spill] sm:$0xff] }
 0x3e2   :  { %2595 = vpow2.f32 %v1987_v36  ;;  %v1988_v42 = vmul.f32 -1.442695, %v1070_v41 }
 0x3e4   :  { %2597 = vpow2.f32 %v1988_v42 }
 0x3ef   :  { %v2596_v45 = vpop.eup %2595 }
 0x3f0   :  { %v1067_v46 = vadd.f32 1.0, %v2596_v45 }
 0x3f1   :  { %v2598_v47 = vpop.eup %2597 }
 0x3f2   :  { %2599 = vrcp.f32 %v1067_v46  ;;  %v1074_v48 = vadd.f32 1.0, %v2598_v47 }
 0x3f4   :  { %2601 = vrcp.f32 %v1074_v48  ;;  %v4246_v48 = vld [vmem:[#allocation27_spill] sm:$0xff] }
 0x3ff   :  { %v2600_v52 = vpop.eup %2599 }
 0x400   :  { %v1078_v53 = vmul.f32 %v2600_v52, %v1077_v51 }
 0x401   :  { %v2602_v57 = vpop.eup %2601 }
 0x402   :  { %v1079_v56 = vadd.f32 %v1078_v53, %v4241_v54  ;;  %v1081_v58 = vsub.f32 1.0, %v2602_v57  ;;  %v1083_v62 = vmul.f32 %v2602_v57, %v3467_v49  ;;  %v3770_v49 = vld [vmem:[%s4166_s2] sm:$0xff] }
 0x403   :  { %4243 = vst [vmem:[#allocation10_spill] sm:$0xff] %v3770_v49 }
 0x404   :  { %2603 = vtanh.f32 %v1079_v56 }
 0x411   :  { %v2604_v59 = vpop.eup %2603 }
 0x412   :  { %v1082_v60 = vmul.f32 %v2604_v59, %v1081_v58  ;;  %v3796_v59 = vld [vmem:[%s4166_s2 + $0x160] sm:$0xff] }
 0x414   :  { %v3548_v55 = vadd.f32 %v1083_v62, %v1082_v60  ;;  %v3805_v60 = vld [vmem:[%s4166_s2 + $0x148] sm:$0xff]  ;;  %v3814_v62 = vld [vmem:[%s4166_s2 + $0x130] sm:$0xff] }
 0x416   :  { %1156 = vmatmul.mubr.f32.vlgmr.msra.gmra.mxu0 %v3548_v55  ;;  %2386 = vmatmul.mubr.f32.vlgmr.msra.gmra.mxu1 %v3548_v55 }
 0x417   :  { %1261 = vmatpush1.msra.mxu0 %v3555_v37  ;;  %2389 = vmatpush3.msra.mxu1 %v3561_v21 }
 0x418   :  { %1262 = vmatprep.subr.mxu0 %v3567_v31  ;;  %2390 = vmatprep.subr.mxu1 %v4218_v18 }
 0x419   :  { %1263 = vmatpush1.msra.mxu0 %v3574_v3  ;;  %2391 = vmatpush3.msra.mxu1 %v3075_v2  ;;  %v3595_v2 = vld [vmem:[%s4166_s2 + $0x128] sm:$0xff] }
 0x41a   :  { %1264 = vmatprep.subr.mxu0 %v3581_v1  ;;  %2392 = vmatprep.subr.mxu1 %v4218_v18 }
 0x41b   :  { %1265 = vmatpush1.msra.mxu0 %v3588_v63  ;;  %2393 = vmatpush3.msra.mxu1 %v3084_v4  ;;  %v3609_v4 = vld [vmem:[%s4166_s2 + $0x110] sm:$0xff] }
 0x41c   :  { %1266 = vmatprep.subr.mxu0 %v3595_v2  ;;  %2394 = vmatprep.subr.mxu1 %v4218_v18 }
 0x41d   :  { %1267 = vmatpush1.msra.mxu0 %v3602_v16  ;;  %2395 = vmatpush3.msra.mxu1 %v3093_v5  ;;  %v3623_v5 = vld [vmem:[%s4166_s2 + $0xf8] sm:$0xff] }
 0x41e   :  { %1268 = vmatprep.subr.mxu0 %v3609_v4  ;;  %2396 = vmatprep.subr.mxu1 %v4218_v18 }
 0x41f   :  { %1269 = vmatpush1.msra.mxu0 %v3616_v26  ;;  %2397 = vmatpush3.msra.mxu1 %v3102_v6  ;;  %v3637_v6 = vld [vmem:[%s4166_s2 + $0xe0] sm:$0xff] }
 0x420   :  { %1270 = vmatprep.subr.mxu0 %v3623_v5  ;;  %2398 = vmatprep.subr.mxu1 %v4218_v18 }
 0x421   :  { %1271 = vmatpush1.msra.mxu0 %v3630_v19  ;;  %2399 = vmatpush3.msra.mxu1 %v3113_v7  ;;  %v3651_v7 = vld [vmem:[%s4166_s2 + $0xc8] sm:$0xff] }
 0x422   :  { %1272 = vmatprep.subr.mxu0 %v3637_v6  ;;  %2400 = vmatprep.subr.mxu1 %v4218_v18 }
 0x423   :  { %1273 = vmatpush1.msra.mxu0 %v3644_v61  ;;  %2401 = vmatpush3.msra.mxu1 %v3122_v8  ;;  %v3665_v8 = vld [vmem:[%s4166_s2 + $0xb0] sm:$0xff] }
 0x424   :  { %1274 = vmatprep.subr.mxu0 %v3651_v7  ;;  %2402 = vmatprep.subr.mxu1 %v4218_v18 }
 0x425   :  { %1275 = vmatpush1.msra.mxu0 %v3658_v50  ;;  %2403 = vmatpush3.msra.mxu1 %v3132_v9  ;;  %v3679_v9 = vld [vmem:[%s4166_s2 + $0x98] sm:$0xff] }
 0x426   :  { %1276 = vmatprep.subr.mxu0 %v3665_v8  ;;  %2404 = vmatprep.subr.mxu1 %v4218_v18 }
 0x427   :  { %1277 = vmatpush1.msra.mxu0 %v3672_v44  ;;  %2405 = vmatpush3.msra.mxu1 %v3141_v10  ;;  %v3693_v10 = vld [vmem:[%s4166_s2 + $0x80] sm:$0xff] }
 0x428   :  { %1278 = vmatprep.subr.mxu0 %v3679_v9  ;;  %2406 = vmatprep.subr.mxu1 %v4218_v18 }
 0x429   :  { %1279 = vmatpush1.msra.mxu0 %v3686_v38  ;;  %2407 = vmatpush3.msra.mxu1 %v3151_v11  ;;  %v3707_v11 = vld [vmem:[%s4166_s2 + $0x68] sm:$0xff] }
 0x42a   :  { %1280 = vmatprep.subr.mxu0 %v3693_v10  ;;  %2408 = vmatprep.subr.mxu1 %v4218_v18 }
 0x42b   :  { %1281 = vmatpush1.msra.mxu0 %v3700_v43  ;;  %2409 = vmatpush3.msra.mxu1 %v3160_v12  ;;  %v3721_v12 = vld [vmem:[%s4166_s2 + $0x50] sm:$0xff] }
 0x42c   :  { %1282 = vmatprep.subr.mxu0 %v3707_v11  ;;  %2410 = vmatprep.subr.mxu1 %v4218_v18 }
 0x42d   :  { %1283 = vmatpush1.msra.mxu0 %v3714_v20  ;;  %2411 = vmatpush3.msra.mxu1 %v3169_v13  ;;  %v3735_v13 = vld [vmem:[%s4166_s2 + $0x38] sm:$0xff] }
 0x42e   :  { %1284 = vmatprep.subr.mxu0 %v3721_v12  ;;  %2412 = vmatprep.subr.mxu1 %v4218_v18 }
 0x42f   :  { %1285 = vmatpush1.msra.mxu0 %v3728_v17  ;;  %2413 = vmatpush3.msra.mxu1 %v3178_v14  ;;  %v3749_v14 = vld [vmem:[%s4166_s2 + $0x20] sm:$0xff] }
 0x430   :  { %1286 = vmatprep.subr.mxu0 %v3735_v13  ;;  %2414 = vmatprep.subr.mxu1 %v4218_v18 }
 0x431   :  { %1287 = vmatpush1.msra.mxu0 %v3742_v25  ;;  %2415 = vmatpush3.msra.mxu1 %v3187_v15  ;;  %v3763_v15 = vld [vmem:[%s4166_s2 + $0x8] sm:$0xff] }
 0x432   :  { %1288 = vmatprep.subr.mxu0 %v3749_v14  ;;  %2416 = vmatprep.subr.mxu1 %v4218_v18  ;;  %4242 = vst [vmem:[#allocation5_spill] sm:$0xff] %v3763_v15 }
 0x433   :  { %1289 = vmatpush1.msra.mxu0 %v3756_v32  ;;  %2417 = vmatpush3.msra.mxu1 %v4235_v22 }
 0x434   :  { %1290 = vmatprep.subr.mxu0 %v3763_v15  ;;  %2418 = vmatprep.subr.mxu1 %v4218_v18 }
 0x435   :  { %1291 = vmatpush1.msra.mxu0 %v3770_v49  ;;  %1324 = vmatprep.mubr.f32.mxu0 %v4218_v18 }
 0x436   :  { %2419 = vmatpush3.msra.mxu1 %v4238_v27  ;;  %2420 = vmatprep.mubr.msk.f32.mxu1 %vm2695_vm1, %v4218_v18 }
 0x437   :  { %1429 = vmatprep.subr.mxu0 %v3539_v28  ;;  %2423 = vmatprep.subr.mxu1 %v4218_v18 }
 0x4d6   :  { %v1157_v22 = vpop.f32.mrf.mxu0  ;;  %v1228_v23 = vpop.f32.mrf.mxu1 }
 0x4d7   :  { %v1232_v29 = vadd.f32 %v1157_v22, %v4244_v24  ;;  %v1246_v45 = vadd.f32 %v3312_v0, %v1228_v23  ;;  %v3832_v22 = vld [vmem:[%s4166_s2 + $0x100] sm:$0xff]  ;;  %v3841_v23 = vld [vmem:[%s4166_s2 + $0xe8] sm:$0xff]  ;;  %v3850_v24 = vld [vmem:[%s4166_s2 + $0xd0] sm:$0xff] }
 0x4d8   :  { %v2387_v30 = vpop.f32.mrf.mxu1  ;;  %v1159_v34 = vpop.f32.mrf.mxu0 }
 0x4d9   :  { %v1989_v33 = vmul.f32 -1.442695, %v1232_v29  ;;  %v1239_v36 = vadd.f32 %v1159_v34, %v4245_v35  ;;  %v3859_v29 = vld [vmem:[%s4166_s2 + $0xb8] sm:$0xff]  ;;  %v3868_v30 = vld [vmem:[%s4166_s2 + $0xa0] sm:$0xff]  ;;  %v3886_v34 = vld [vmem:[%s4166_s2 + $0x70] sm:$0xff] }
 0x4da   :  { %v3895_v35 = vld [vmem:[%s4166_s2 + $0x58] sm:$0xff] }
 0x4db   :  { %2605 = vpow2.f32 %v1989_v33  ;;  %v1990_v39 = vmul.f32 -1.442695, %v1239_v36  ;;  %v3877_v33 = vld [vmem:[%s4166_s2 + $0x88] sm:$0xff]  ;;  %v3904_v36 = vld [vmem:[%s4166_s2 + $0x40] sm:$0xff] }
 0x4dd   :  { %2607 = vpow2.f32 %v1990_v39  ;;  %v3913_v39 = vld [vmem:[%s4166_s2 + $0x28] sm:$0xff] }
 0x4de   :  { %4247 = vst [vmem:[#allocation11_spill] sm:$0xff] %v3913_v39 }
 0x4e8   :  { %v2606_v27 = vpop.eup %2605 }
 0x4e9   :  { %v1236_v40 = vadd.f32 1.0, %v2606_v27  ;;  %v3923_v27 = vld [vmem:[%s4166_s2 + $0x10] sm:$0xff] }
 0x4ea   :  { %v2608_v41 = vpop.eup %2607  ;;  %4248 = vst [vmem:[#allocation4_spill] sm:$0xff] %v3923_v27 }
 0x4eb   :  { %2609 = vrcp.f32 %v1236_v40  ;;  %v1243_v42 = vadd.f32 1.0, %v2608_v41 }
 0x4ed   :  { %2611 = vrcp.f32 %v1243_v42  ;;  %v4249_v42 = vld [vmem:[#allocation18_spill] sm:$0xff] }
 0x4f8   :  { %v2610_v46 = vpop.eup %2609 }
 0x4f9   :  { %v1247_v47 = vmul.f32 %v2610_v46, %v1246_v45 }
 0x4fa   :  { %v2612_v52 = vpop.eup %2611 }
 0x4fb   :  { %v1248_v51 = vadd.f32 %v1247_v47, %v4246_v48  ;;  %v1250_v53 = vsub.f32 1.0, %v2612_v52  ;;  %v1252_v57 = vmul.f32 %v2612_v52, %v3548_v55  ;;  %v3823_v55 = vld [vmem:[%s4166_s2 + $0x118] sm:$0xff] }
 0x4fd   :  { %2613 = vtanh.f32 %v1248_v51  ;;  %v4250_v51 = vld [vmem:[#allocation19_spill] sm:$0xff] }
 0x50a   :  { %v2614_v54 = vpop.eup %2613 }
 0x50b   :  { %v1251_v56 = vmul.f32 %v2614_v54, %v1250_v53 }
 0x50d   :  { %v3784_v58 = vadd.f32 %v1252_v57, %v1251_v56 }
 0x50f   :  { %1325 = vmatmul.mubr.f32.vlgmr.msra.gmra.mxu0 %v3784_v58  ;;  %2421 = vmatmul.mubr.f32.vlgmr.msra.gmra.mxu1 %v3784_v58 }
 0x510   :  { %1430 = vmatpush1.msra.mxu0 %v3555_v37  ;;  %2424 = vmatpush3.msra.mxu1 %v3561_v21 }
 0x511   :  { %1431 = vmatprep.subr.mxu0 %v3567_v31  ;;  %2425 = vmatprep.subr.mxu1 %v4218_v18 }
 0x512   :  { %1432 = vmatpush1.msra.mxu0 %v3574_v3  ;;  %2426 = vmatpush3.msra.mxu1 %v3796_v59 }
 0x513   :  { %1433 = vmatprep.subr.mxu0 %v3581_v1  ;;  %2427 = vmatprep.subr.mxu1 %v4218_v18 }
 0x514   :  { %1434 = vmatpush1.msra.mxu0 %v3588_v63  ;;  %2428 = vmatpush3.msra.mxu1 %v3805_v60 }
 0x515   :  { %1435 = vmatprep.subr.mxu0 %v3595_v2  ;;  %2429 = vmatprep.subr.mxu1 %v4218_v18 }
 0x516   :  { %1436 = vmatpush1.msra.mxu0 %v3602_v16  ;;  %2430 = vmatpush3.msra.mxu1 %v3814_v62 }
 0x517   :  { %1437 = vmatprep.subr.mxu0 %v3609_v4  ;;  %2431 = vmatprep.subr.mxu1 %v4218_v18 }
 0x518   :  { %1438 = vmatpush1.msra.mxu0 %v3616_v26  ;;  %2432 = vmatpush3.msra.mxu1 %v3823_v55 }
 0x519   :  { %1439 = vmatprep.subr.mxu0 %v3623_v5  ;;  %2433 = vmatprep.subr.mxu1 %v4218_v18 }
 0x51a   :  { %1440 = vmatpush1.msra.mxu0 %v3630_v19  ;;  %2434 = vmatpush3.msra.mxu1 %v3832_v22 }
 0x51b   :  { %1441 = vmatprep.subr.mxu0 %v3637_v6  ;;  %2435 = vmatprep.subr.mxu1 %v4218_v18 }
 0x51c   :  { %1442 = vmatpush1.msra.mxu0 %v3644_v61  ;;  %2436 = vmatpush3.msra.mxu1 %v3841_v23 }
 0x51d   :  { %1443 = vmatprep.subr.mxu0 %v3651_v7  ;;  %2437 = vmatprep.subr.mxu1 %v4218_v18 }
 0x51e   :  { %1444 = vmatpush1.msra.mxu0 %v3658_v50  ;;  %2438 = vmatpush3.msra.mxu1 %v3850_v24 }
 0x51f   :  { %1445 = vmatprep.subr.mxu0 %v3665_v8  ;;  %2439 = vmatprep.subr.mxu1 %v4218_v18 }
 0x520   :  { %1446 = vmatpush1.msra.mxu0 %v3672_v44  ;;  %2440 = vmatpush3.msra.mxu1 %v3859_v29 }
 0x521   :  { %1447 = vmatprep.subr.mxu0 %v3679_v9  ;;  %2441 = vmatprep.subr.mxu1 %v4218_v18 }
 0x522   :  { %1448 = vmatpush1.msra.mxu0 %v3686_v38  ;;  %2442 = vmatpush3.msra.mxu1 %v3868_v30 }
 0x523   :  { %1449 = vmatprep.subr.mxu0 %v3693_v10  ;;  %2443 = vmatprep.subr.mxu1 %v4218_v18 }
 0x524   :  { %1450 = vmatpush1.msra.mxu0 %v3700_v43  ;;  %2444 = vmatpush3.msra.mxu1 %v3877_v33 }
 0x525   :  { %1451 = vmatprep.subr.mxu0 %v3707_v11  ;;  %2445 = vmatprep.subr.mxu1 %v4218_v18 }
 0x526   :  { %1452 = vmatpush1.msra.mxu0 %v3714_v20  ;;  %2446 = vmatpush3.msra.mxu1 %v3886_v34 }
 0x527   :  { %1453 = vmatprep.subr.mxu0 %v3721_v12  ;;  %2447 = vmatprep.subr.mxu1 %v4218_v18 }
 0x528   :  { %1454 = vmatpush1.msra.mxu0 %v3728_v17  ;;  %2448 = vmatpush3.msra.mxu1 %v3895_v35 }
 0x529   :  { %1455 = vmatprep.subr.mxu0 %v3735_v13  ;;  %2449 = vmatprep.subr.mxu1 %v4218_v18 }
 0x52a   :  { %1456 = vmatpush1.msra.mxu0 %v3742_v25  ;;  %2450 = vmatpush3.msra.mxu1 %v3904_v36 }
 0x52b   :  { %1457 = vmatprep.subr.mxu0 %v3749_v14  ;;  %2451 = vmatprep.subr.mxu1 %v4218_v18 }
 0x52c   :  { %1458 = vmatpush1.msra.mxu0 %v3756_v32  ;;  %2452 = vmatpush3.msra.mxu1 %v3913_v39  ;;  %v4251_v39 = vld [vmem:[#allocation26_spill] sm:$0xff] }
 0x52d   :  { %1459 = vmatprep.subr.mxu0 %v3763_v15  ;;  %2453 = vmatprep.subr.mxu1 %v4218_v18 }
 0x52e   :  { %1460 = vmatpush1.msra.mxu0 %v3770_v49  ;;  %1493 = vmatprep.mubr.f32.mxu0 %v4218_v18 }
 0x52f   :  { %2454 = vmatpush3.msra.mxu1 %v3923_v27  ;;  %2455 = vmatprep.mubr.msk.f32.mxu1 %vm2695_vm1, %v4218_v18 }
 0x530   :  { %1598 = vmatprep.subr.mxu0 %v3539_v28  ;;  %2458 = vmatprep.subr.mxu1 %v4218_v18 }
 0x5cf   :  { %v1326_v40 = vpop.f32.mrf.mxu0  ;;  %v1397_v41 = vpop.f32.mrf.mxu1 }
 0x5d0   :  { %v1401_v45 = vadd.f32 %v1326_v40, %v4249_v42  ;;  %v1415_v28 = vadd.f32 %v3312_v0, %v1397_v41  ;;  %v4252_v0 = vld [vmem:[#allocation11_spill] sm:$0xff]  ;;  %v1871_v41 = vld [vmem:[%s4170_s7 + $0x60] sm:$0xff] }
 0x5d1   :  { %v2422_v46 = vpop.f32.mrf.mxu1  ;;  %v1328_v48 = vpop.f32.mrf.mxu0 }
 0x5d2   :  { %v1991_v47 = vmul.f32 -1.442695, %v1401_v45  ;;  %v1408_v52 = vadd.f32 %v1328_v48, %v4250_v51 }
 0x5d4   :  { %2615 = vpow2.f32 %v1991_v47  ;;  %v1992_v53 = vmul.f32 -1.442695, %v1408_v52  ;;  %v1870_v52 = vld [vmem:[%s4170_s7 + $0x58] sm:$0xff] }
 0x5d6   :  { %2617 = vpow2.f32 %v1992_v53  ;;  %v1869_v53 = vld [vmem:[%s4170_s7 + $0x50] sm:$0xff] }
 0x5e1   :  { %v2616_v54 = vpop.eup %2615 }
 0x5e2   :  { %v1405_v56 = vadd.f32 1.0, %v2616_v54  ;;  %v1868_v54 = vld [vmem:[%s4170_s7 + $0x48] sm:$0xff] }
 0x5e3   :  { %v2618_v57 = vpop.eup %2617 }
 0x5e4   :  { %2619 = vrcp.f32 %v1405_v56  ;;  %v1412_v27 = vadd.f32 1.0, %v2618_v57  ;;  %v1867_v56 = vld [vmem:[%s4170_s7 + $0x40] sm:$0xff]  ;;  %v1866_v57 = vld [vmem:[%s4170_s7 + $0x38] sm:$0xff] }
 0x5e6   :  { %2621 = vrcp.f32 %v1412_v27  ;;  %v1872_v27 = vld [vmem:[%s4170_s7 + $0x68] sm:$0xff] }
 0x5f1   :  { %v2620_v49 = vpop.eup %2619 }
 0x5f2   :  { %v1416_v15 = vmul.f32 %v2620_v49, %v1415_v28  ;;  %v1778_v49 = vld [vmem:[%s4169_s5 + $0x68] sm:$0xff]  ;;  %v1865_v28 = vld [vmem:[%s4170_s7 + $0x30] sm:$0xff] }
 0x5f3   :  { %v2622_v42 = vpop.eup %2621 }
 0x5f4   :  { %v1417_v40 = vadd.f32 %v1416_v15, %v4251_v39  ;;  %v1419_v45 = vsub.f32 1.0, %v2622_v42  ;;  %v1421_v48 = vmul.f32 %v2622_v42, %v3784_v58  ;;  %v1779_v15 = vld [vmem:[%s4169_s5 + $0x70] sm:$0xff]  ;;  %v1777_v58 = vld [vmem:[%s4169_s5 + $0x60] sm:$0xff] }
 0x5f5   :  { %v1873_v39 = vld [vmem:[%s4170_s7 + $0x70] sm:$0xff]  ;;  %v1863_v42 = vld [vmem:[%s4170_s7 + $0x20] sm:$0xff] }
 0x5f6   :  { %2623 = vtanh.f32 %v1417_v40  ;;  %v1864_v40 = vld [vmem:[%s4170_s7 + $0x28] sm:$0xff] }
 0x603   :  { %v2624_v46 = vpop.eup %2623 }
 0x604   :  { %v1420_v47 = vmul.f32 %v2624_v46, %v1419_v45  ;;  %v1862_v45 = vld [vmem:[%s4170_s7 + $0x18] sm:$0xff] }
 0x606   :  { %v3935_v51 = vadd.f32 %v1421_v48, %v1420_v47  ;;  %v4259_v48 = vld [vmem:[#allocation22_spill] sm:$0xff] }
 0x608   :  { %1494 = vmatmul.mubr.f32.vlgmr.msra.gmra.mxu0 %v3935_v51  ;;  %2456 = vmatmul.mubr.f32.vlgmr.msra.gmra.mxu1 %v3935_v51 }
 0x609   :  { %1599 = vmatpush1.msra.mxu0 %v3555_v37  ;;  %2459 = vmatpush3.msra.mxu1 %v3561_v21  ;;  %v4253_v37 = vld [vmem:[#allocation5_spill] sm:$0xff]  ;;  %v4254_v21 = vld [vmem:[#allocation10_spill] sm:$0xff] }
 0x60a   :  { %1600 = vmatprep.subr.mxu0 %v3567_v31  ;;  %2460 = vmatprep.subr.mxu1 %v4218_v18  ;;  %v4255_v31 = vld [vmem:[#allocation4_spill] sm:$0xff] }
 0x60b   :  { %1601 = vmatpush1.msra.mxu0 %v3574_v3  ;;  %2461 = vmatpush3.msra.mxu1 %v3796_v59  ;;  %v1776_v59 = vld [vmem:[%s4169_s5 + $0x58] sm:$0xff] }
 0x60c   :  { %1602 = vmatprep.subr.mxu0 %v3581_v1  ;;  %2462 = vmatprep.subr.mxu1 %v4218_v18 }
 0x60d   :  { %1603 = vmatpush1.msra.mxu0 %v3588_v63  ;;  %2463 = vmatpush3.msra.mxu1 %v3805_v60  ;;  %v4256_v63 = vld [vmem:[#allocation20_spill] sm:$0xff]  ;;  %v1775_v60 = vld [vmem:[%s4169_s5 + $0x50] sm:$0xff] }
 0x60e   :  { %1604 = vmatprep.subr.mxu0 %v3595_v2  ;;  %2464 = vmatprep.subr.mxu1 %v4218_v18 }
 0x60f   :  { %1605 = vmatpush1.msra.mxu0 %v3602_v16  ;;  %2465 = vmatpush3.msra.mxu1 %v3814_v62  ;;  %v1774_v62 = vld [vmem:[%s4169_s5 + $0x48] sm:$0xff] }
 0x610   :  { %1606 = vmatprep.subr.mxu0 %v3609_v4  ;;  %2466 = vmatprep.subr.mxu1 %v4218_v18 }
 0x611   :  { %1607 = vmatpush1.msra.mxu0 %v3616_v26  ;;  %2467 = vmatpush3.msra.mxu1 %v3823_v55  ;;  %v1773_v55 = vld [vmem:[%s4169_s5 + $0x40] sm:$0xff] }
 0x612   :  { %1608 = vmatprep.subr.mxu0 %v3623_v5  ;;  %2468 = vmatprep.subr.mxu1 %v4218_v18  ;;  %v4257_v5 = vld [vmem:[#allocation21_spill] sm:$0xff] }
 0x613   :  { %1609 = vmatpush1.msra.mxu0 %v3630_v19  ;;  %2469 = vmatpush3.msra.mxu1 %v3832_v22  ;;  %v1772_v22 = vld [vmem:[%s4169_s5 + $0x38] sm:$0xff] }
 0x614   :  { %1610 = vmatprep.subr.mxu0 %v3637_v6  ;;  %2470 = vmatprep.subr.mxu1 %v4218_v18 }
 0x615   :  { %1611 = vmatpush1.msra.mxu0 %v3644_v61  ;;  %2471 = vmatpush3.msra.mxu1 %v3841_v23  ;;  %v1771_v23 = vld [vmem:[%s4169_s5 + $0x30] sm:$0xff] }
 0x616   :  { %1612 = vmatprep.subr.mxu0 %v3651_v7  ;;  %2472 = vmatprep.subr.mxu1 %v4218_v18 }
 0x617   :  { %1613 = vmatpush1.msra.mxu0 %v3658_v50  ;;  %2473 = vmatpush3.msra.mxu1 %v3850_v24  ;;  %v1770_v24 = vld [vmem:[%s4169_s5 + $0x28] sm:$0xff] }
 0x618   :  { %1614 = vmatprep.subr.mxu0 %v3665_v8  ;;  %2474 = vmatprep.subr.mxu1 %v4218_v18 }
 0x619   :  { %1615 = vmatpush1.msra.mxu0 %v3672_v44  ;;  %2475 = vmatpush3.msra.mxu1 %v3859_v29  ;;  %v4011_v44 = vld [vmem:[%s4168_s4] ss:$0 sm:$0xff] }
 0x61a   :  { %1616 = vmatprep.subr.mxu0 %v3679_v9  ;;  %2476 = vmatprep.subr.mxu1 %v4218_v18  ;;  %v1769_v29 = vld [vmem:[%s4169_s5 + $0x20] sm:$0xff] }
 0x61b   :  { %1617 = vmatpush1.msra.mxu0 %v3686_v38  ;;  %2477 = vmatpush3.msra.mxu1 %v3868_v30  ;;  %v1768_v30 = vld [vmem:[%s4169_s5 + $0x18] sm:$0xff] }
 0x61c   :  { %1618 = vmatprep.subr.mxu0 %v3693_v10  ;;  %2478 = vmatprep.subr.mxu1 %v4218_v18 }
 0x61d   :  { %1619 = vmatpush1.msra.mxu0 %v3700_v43  ;;  %2479 = vmatpush3.msra.mxu1 %v3877_v33  ;;  %v4258_v43 = vld [vmem:[#allocation29_spill] sm:$0xff]  ;;  %v1767_v33 = vld [vmem:[%s4169_s5 + $0x10] sm:$0xff] }
 0x61e   :  { %1620 = vmatprep.subr.mxu0 %v3707_v11  ;;  %2480 = vmatprep.subr.mxu1 %v4218_v18 }
 0x61f   :  { %1621 = vmatpush1.msra.mxu0 %v3714_v20  ;;  %2481 = vmatpush3.msra.mxu1 %v3886_v34  ;;  %v1766_v34 = vld [vmem:[%s4169_s5 + $0x8] sm:$0xff] }
 0x620   :  { %1622 = vmatprep.subr.mxu0 %v3721_v12  ;;  %2482 = vmatprep.subr.mxu1 %v4218_v18 }
 0x621   :  { %1623 = vmatpush1.msra.mxu0 %v3728_v17  ;;  %2483 = vmatpush3.msra.mxu1 %v3895_v35  ;;  %v1765_v35 = vld [vmem:[%s4169_s5] sm:$0xff] }
 0x622   :  { %1624 = vmatprep.subr.mxu0 %v3735_v13  ;;  %2484 = vmatprep.subr.mxu1 %v4218_v18 }
 0x623   :  { %1625 = vmatpush1.msra.mxu0 %v3742_v25  ;;  %2485 = vmatpush3.msra.mxu1 %v3904_v36  ;;  %v1874_v36 = vld [vmem:[%s4170_s7 + $0x78] sm:$0xff] }
 0x624   :  { %1626 = vmatprep.subr.mxu0 %v3749_v14  ;;  %2486 = vmatprep.subr.mxu1 %v4218_v18 }
 0x625   :  { %1627 = vmatpush1.msra.mxu0 %v3756_v32  ;;  %2487 = vmatpush3.msra.mxu1 %v4252_v0  ;;  %v1780_v32 = vld [vmem:[%s4169_s5 + $0x78] sm:$0xff] }
 0x626   :  { %1628 = vmatprep.subr.mxu0 %v4253_v37  ;;  %2488 = vmatprep.subr.mxu1 %v4218_v18 }
 0x627   :  { %1629 = vmatpush1.msra.mxu0 %v4254_v21  ;;  %1662 = vmatprep.mubr.f32.mxu0 %v4218_v18 }
 0x628   :  { %2489 = vmatpush3.msra.mxu1 %v4255_v31  ;;  %2490 = vmatprep.mubr.msk.f32.mxu1 %vm2695_vm1, %v4218_v18  ;;  %v4260_v31 = vld [vmem:[#allocation23_spill] sm:$0xff] }
 0x629   :  { %2493 = vmatprep.subr.mxu0 %v4218_v18  ;;  %2528 = vmatprep.subr.mxu1 %v4218_v18 }
 0x6c8   :  { %v1495_v3 = vpop.f32.mrf.mxu0  ;;  %v1566_v1 = vpop.f32.mrf.mxu1 }
 0x6c9   :  { %v1570_v2 = vadd.f32 %v1495_v3, %v4256_v63  ;;  %v1584_v9 = vadd.f32 %v4011_v44, %v1566_v1 }
 0x6ca   :  { %v2457_v16 = vpop.f32.mrf.mxu1  ;;  %v1497_v26 = vpop.f32.mrf.mxu0 }
 0x6cb   :  { %v1993_v4 = vmul.f32 -1.442695, %v1570_v2  ;;  %v1577_v19 = vadd.f32 %v1497_v26, %v4257_v5 }
 0x6cd   :  { %2625 = vpow2.f32 %v1993_v4  ;;  %v1994_v6 = vmul.f32 -1.442695, %v1577_v19 }
 0x6cf   :  { %2627 = vpow2.f32 %v1994_v6  ;;  %v4261_v6 = vld [vmem:[#allocation28_spill] sm:$0xff] }
 0x6da   :  { %v2626_v61 = vpop.eup %2625 }
 0x6db   :  { %v1574_v7 = vadd.f32 1.0, %v2626_v61 }
 0x6dc   :  { %v2628_v50 = vpop.eup %2627 }
 0x6dd   :  { %2629 = vrcp.f32 %v1574_v7  ;;  %v1581_v8 = vadd.f32 1.0, %v2628_v50 }
 0x6df   :  { %2631 = vrcp.f32 %v1581_v8 }
 0x6ea   :  { %v2630_v38 = vpop.eup %2629 }
 0x6eb   :  { %v1585_v10 = vmul.f32 %v2630_v38, %v1584_v9 }
 0x6ec   :  { %v2632_v20 = vpop.eup %2631 }
 0x6ed   :  { %v1586_v11 = vadd.f32 %v1585_v10, %v4258_v43  ;;  %v1588_v12 = vsub.f32 1.0, %v2632_v20  ;;  %v1590_v25 = vmul.f32 %v2632_v20, %v3935_v51  ;;  %v1861_v43 = vld [vmem:[%s4170_s7 + $0x10] sm:$0xff]  ;;  %v1997_v20 = vld [vmem:[%s4171_s6] ss:$0 sm:$0xff] }
 0x6ef   :  { %2633 = vtanh.f32 %v1586_v11  ;;  %v1859_v11 = vld [vmem:[%s4170_s7] sm:$0xff] }
 0x6fc   :  { %v2634_v17 = vpop.eup %2633 }
 0x6fd   :  { %v1589_v13 = vmul.f32 %v2634_v17, %v1588_v12 }
 0x6ff   :  { %v4016_v14 = vadd.f32 %v1590_v25, %v1589_v13 }
 0x701   :  { %1663 = vmatmul.mubr.f32.vlgmr.msra.gmra.mxu0 %v4016_v14  ;;  %2491 = vmatmul.mubr.f32.vlgmr.msra.gmra.mxu1 %v4016_v14 }
 0x702   :  { %2525 = vmatprep.mubr.msk.f32.mxu0 %vm2695_vm1, %v4218_v18  ;;  %2560 = vmatprep.mubr.msk.f32.mxu1 %vm2695_vm1, %v4218_v18 }
 0x703   :  { %2494 = vmatpush3.msra.mxu0 %v1780_v32  ;;  %2529 = vmatpush3.msra.mxu1 %v1874_v36 }
 0x704   :  { %2495 = vmatprep.subr.mxu0 %v4218_v18  ;;  %2530 = vmatprep.subr.mxu1 %v4218_v18 }
 0x705   :  { %2496 = vmatpush3.msra.mxu0 %v1779_v15  ;;  %2531 = vmatpush3.msra.mxu1 %v1873_v39 }
 0x706   :  { %2497 = vmatprep.subr.mxu0 %v4218_v18  ;;  %2532 = vmatprep.subr.mxu1 %v4218_v18 }
 0x707   :  { %2498 = vmatpush3.msra.mxu0 %v1778_v49  ;;  %2533 = vmatpush3.msra.mxu1 %v1872_v27 }
 0x708   :  { %2499 = vmatprep.subr.mxu0 %v4218_v18  ;;  %2534 = vmatprep.subr.mxu1 %v4218_v18 }
 0x709   :  { %2500 = vmatpush3.msra.mxu0 %v1777_v58  ;;  %2535 = vmatpush3.msra.mxu1 %v1871_v41 }
 0x70a   :  { %2501 = vmatprep.subr.mxu0 %v4218_v18  ;;  %2536 = vmatprep.subr.mxu1 %v4218_v18 }
 0x70b   :  { %2502 = vmatpush3.msra.mxu0 %v1776_v59  ;;  %2537 = vmatpush3.msra.mxu1 %v1870_v52 }
 0x70c   :  { %2503 = vmatprep.subr.mxu0 %v4218_v18  ;;  %2538 = vmatprep.subr.mxu1 %v4218_v18 }
 0x70d   :  { %2504 = vmatpush3.msra.mxu0 %v1775_v60  ;;  %2539 = vmatpush3.msra.mxu1 %v1869_v53 }
 0x70e   :  { %2505 = vmatprep.subr.mxu0 %v4218_v18  ;;  %2540 = vmatprep.subr.mxu1 %v4218_v18 }
 0x70f   :  { %2506 = vmatpush3.msra.mxu0 %v1774_v62  ;;  %2541 = vmatpush3.msra.mxu1 %v1868_v54 }
 0x710   :  { %2507 = vmatprep.subr.mxu0 %v4218_v18  ;;  %2542 = vmatprep.subr.mxu1 %v4218_v18 }
 0x711   :  { %2508 = vmatpush3.msra.mxu0 %v1773_v55  ;;  %2543 = vmatpush3.msra.mxu1 %v1867_v56 }
 0x712   :  { %2509 = vmatprep.subr.mxu0 %v4218_v18  ;;  %2544 = vmatprep.subr.mxu1 %v4218_v18 }
 0x713   :  { %2510 = vmatpush3.msra.mxu0 %v1772_v22  ;;  %2545 = vmatpush3.msra.mxu1 %v1866_v57 }
 0x714   :  { %2511 = vmatprep.subr.mxu0 %v4218_v18  ;;  %2546 = vmatprep.subr.mxu1 %v4218_v18 }
 0x715   :  { %2512 = vmatpush3.msra.mxu0 %v1771_v23  ;;  %2547 = vmatpush3.msra.mxu1 %v1865_v28 }
 0x716   :  { %2513 = vmatprep.subr.mxu0 %v4218_v18  ;;  %2548 = vmatprep.subr.mxu1 %v4218_v18 }
 0x717   :  { %2514 = vmatpush3.msra.mxu0 %v1770_v24  ;;  %2549 = vmatpush3.msra.mxu1 %v1864_v40 }
 0x718   :  { %2515 = vmatprep.subr.mxu0 %v4218_v18  ;;  %2550 = vmatprep.subr.mxu1 %v4218_v18 }
 0x719   :  { %2516 = vmatpush3.msra.mxu0 %v1769_v29  ;;  %2551 = vmatpush3.msra.mxu1 %v1863_v42 }
 0x71a   :  { %2517 = vmatprep.subr.mxu0 %v4218_v18  ;;  %2552 = vmatprep.subr.mxu1 %v4218_v18 }
 0x71b   :  { %2518 = vmatpush3.msra.mxu0 %v1768_v30  ;;  %2553 = vmatpush3.msra.mxu1 %v1862_v45 }
 0x71c   :  { %2519 = vmatprep.subr.mxu0 %v4218_v18  ;;  %2554 = vmatprep.subr.mxu1 %v4218_v18 }
 0x71d   :  { %2520 = vmatpush3.msra.mxu0 %v1767_v33  ;;  %2555 = vmatpush3.msra.mxu1 %v1861_v43 }
 0x71e   :  { %2521 = vmatprep.subr.mxu0 %v4218_v18  ;;  %2556 = vmatprep.subr.mxu1 %v4218_v18 }
 0x71f   :  { %2522 = vmatpush3.msra.mxu0 %v1766_v34 }
 0x720   :  { %2523 = vmatprep.subr.mxu0 %v4218_v18 }
 0x721   :  { %2524 = vmatpush3.msra.mxu0 %v1765_v35 }
 0x7c1   :  { %v1664_v46 = vpop.f32.mrf.mxu0  ;;  %v1735_v47 = vpop.f32.mrf.mxu1 }
 0x7c2   :  { %v1739_v51 = vadd.f32 %v1664_v46, %v4259_v48  ;;  %v1753_v26 = vadd.f32 %v4011_v44, %v1735_v47  ;;  %v1860_v44 = vld [vmem:[%s4170_s7 + $0x8] sm:$0xff] }
 0x7c3   :  { %v2492_v0 = vpop.f32.mrf.mxu1  ;;  %v1666_v21 = vpop.f32.mrf.mxu0  ;;  %2557 = vmatpush3.msra.mxu1 %v1860_v44 }
 0x7c4   :  { %v1995_v37 = vmul.f32 -1.442695, %v1739_v51  ;;  %v1746_v3 = vadd.f32 %v1666_v21, %v4260_v31  ;;  %2558 = vmatprep.subr.mxu1 %v4218_v18 }
 0x7c5   :  { %2559 = vmatpush3.msra.mxu1 %v1859_v11 }
 0x7c6   :  { %2635 = vpow2.f32 %v1995_v37  ;;  %v1996_v1 = vmul.f32 -1.442695, %v1746_v3 }
 0x7c8   :  { %2637 = vpow2.f32 %v1996_v1 }
 0x7d3   :  { %v2636_v63 = vpop.eup %2635 }
 0x7d4   :  { %v1743_v2 = vadd.f32 1.0, %v2636_v63 }
 0x7d5   :  { %v2638_v16 = vpop.eup %2637 }
 0x7d6   :  { %2639 = vrcp.f32 %v1743_v2  ;;  %v1750_v4 = vadd.f32 1.0, %v2638_v16 }
 0x7d8   :  { %2641 = vrcp.f32 %v1750_v4 }
 0x7e3   :  { %v2640_v5 = vpop.eup %2639 }
 0x7e4   :  { %v1754_v19 = vmul.f32 %v2640_v5, %v1753_v26 }
 0x7e5   :  { %v2642_v7 = vpop.eup %2641 }
 0x7e6   :  { %v1755_v61 = vadd.f32 %v1754_v19, %v4261_v6  ;;  %v1757_v50 = vsub.f32 1.0, %v2642_v7  ;;  %v1759_v38 = vmul.f32 %v2642_v7, %v4016_v14  ;;  %v1998_v14 = vld [vmem:[%s4172_s8] ss:$0 sm:$0xff] }
 0x7e8   :  { %2643 = vtanh.f32 %v1755_v61 }
 0x7f5   :  { %v2644_v8 = vpop.eup %2643 }
 0x7f6   :  { %v1758_v9 = vmul.f32 %v2644_v8, %v1757_v50 }
 0x7f8   :  { %v1760_v10 = vadd.f32 %v1759_v38, %v1758_v9 }
 0x7fa   :  { %2526 = vmatmul.mubr.f32.vlgmr.msra.gmra.mxu0 %v1760_v10 }
 0x8ba   :  { %v1854_v12 = vpop.f32.mrf.mxu0 }
 0x8bb   :  { %v1855_v17 = vadd.f32 %v1997_v20, %v1854_v12 }
 0x8bc   :  { %v2527_v13 = vpop.f32.mrf.mxu0 }
 0x8bd   :  { %v1858_v25 = vmax.f32 %v1855_v17, 0.0 }
 0x8bf   :  { %2561 = vmatmul.mubr.f32.vlgmr.msra.gmra.mxu1 %v1858_v25 }
 0x97f   :  { %v1948_v32 = vpop.f32.mrf.mxu1 }
 0x980   :  { %v1949_v18 = vadd.f32 %v1998_v14, %v1948_v32 }
 0x981   :  { %v2562_v15 = vpop.f32.mrf.mxu1 }
 0x982   :  { %1952 = vst [vmem:[%s4173_s9] sm:$0xff] %v1949_v18 }

</bundles_post_ra>
